<compile_context>
chip_gen: v7x
topology: tpu7x:2x2x1
jax: 0.10.0
libtpu: 0.0.40
codegen_flags: <defaults>
</compile_context>

<pallas_src>
import numpy as np
import jax
import jax.numpy as jnp
from jax.experimental import pallas as pl
from jax.experimental.pallas import tpu as pltpu


# ----------------------------------------------------------------------------
# Host-side parameter prep: banded conv weights (conv == matmul), 0/1 column
# pooling selection matrices, flatten-permuted / 128-padded FC weights.
# Matmul operands stored bf16 (f32 accumulation in-kernel); biases stay f32.
# ----------------------------------------------------------------------------
def prepare_params(params):
    (wc1, bc1, wc2, bc2, w1, b1, w2, b2, w3, b3) = [
        np.asarray(p, np.float32) for p in params
    ]

    # Banded conv weight: for kernel row kh, a (W_in*Cin, OW*Cout) matrix so
    # that  out[oh, ow*Cout+co] += x[oh+kh, :] @ band[kh].
    def banded(w_hwio, w_in, ow_out):
        K, _, cin, cout = w_hwio.shape
        band = np.zeros((K, w_in * cin, ow_out * cout), np.float32)
        for kh in range(K):
            for kw in range(K):
                for ow in range(ow_out):
                    band[kh,
                         (ow + kw) * cin:(ow + kw + 1) * cin,
                         ow * cout:(ow + 1) * cout] = w_hwio[kh, kw]
        return band

    w1band = banded(wc1, 32, 28)            # (5, 96, 168)
    w2band = banded(wc2, 14, 10)            # (5, 84, 160)
    b1row = np.tile(bc1, 28)[None, :]       # (1, 168)
    b2row = np.tile(bc2, 10)[None, :]       # (1, 160)

    # Column-pool selection (0/1): pick even/odd width blocks of size c on the
    # interleaved (w, c) lane layout and compact to half the lanes.
    def col_sel(p, c, offset):
        m = np.zeros((2 * p * c, p * c), np.float32)
        for q in range(p):
            for ch in range(c):
                m[(2 * q + offset) * c + ch, q * c + ch] = 1.0
        return m

    ce1, co1 = col_sel(14, 6, 0), col_sel(14, 6, 1)    # (168, 84)
    ce2, co2 = col_sel(5, 16, 0), col_sel(5, 16, 1)    # (160, 80)

    # fc1: PyTorch flattens NCHW (c, h, w); our pooled activation rows are h,
    # lanes are (w*16 + c).  Permute weight rows once, split into 5 per-h
    # chunks so fc1 = sum_h p2_rows_h @ wf1[h].  Pad 120 -> 128 outputs.
    wf1 = w1.reshape(16, 5, 5, 120).transpose(1, 2, 0, 3).reshape(5, 80, 120)
    wf1 = np.pad(wf1, ((0, 0), (0, 0), (0, 8)))      # (5, 80, 128)
    bf1 = np.pad(b1, (0, 8))[None, :]                # (1, 128)
    wf2 = np.pad(w2, ((0, 8), (0, 44)))              # (128, 128)
    bf2 = np.pad(b2, (0, 44))[None, :]               # (1, 128)
    wf3 = np.pad(w3, ((0, 44), (0, 118)))            # (128, 128)
    bf3 = np.pad(b3, (0, 118))[None, :]              # (1, 128)

    bf16, f32 = jnp.bfloat16, jnp.float32
    return (jnp.asarray(w1band, bf16), jnp.asarray(b1row, f32),
            jnp.asarray(ce1, bf16), jnp.asarray(co1, bf16),
            jnp.asarray(w2band, bf16), jnp.asarray(b2row, f32),
            jnp.asarray(ce2, bf16), jnp.asarray(co2, bf16),
            jnp.asarray(wf1, bf16), jnp.asarray(bf1, f32),
            jnp.asarray(wf2, bf16), jnp.asarray(bf2, f32),
            jnp.asarray(wf3, bf16), jnp.asarray(bf3, f32))


# ----------------------------------------------------------------------------
# Fully fused forward kernel: BB images per grid step, batch folded into M.
# Slab layout: rows = spatial_row * BB + image, lanes = width * C + channel.
# ----------------------------------------------------------------------------
def _make_kernel(BB):
    bf16 = jnp.bfloat16

    def mm(a, b):
        return jnp.dot(a, b, preferred_element_type=jnp.float32)

    def kernel(x_ref, w1b, b1r, ce1, co1, w2b, b2r, ce2, co2,
               wf1, bf1r, wf2, bf2r, wf3, bf3r, o_ref):
        x = x_ref[0]                                   # (32*BB, 96) bf16

        # ---- conv1: 5 kernel-row matmuls with M = 28*BB, f32 accumulation --
        acc = mm(x[0:28 * BB], w1b[0])
        for kh in range(1, 5):
            acc = acc + mm(x[kh * BB:(kh + 28) * BB], w1b[kh])
        y1 = jnp.maximum(acc + b1r[...], 0.0)          # (28*BB, 168) f32

        # ---- pool1: lane compaction on the MXU, row max on the VPU ----
        y1b = y1.astype(bf16)
        c1 = jnp.maximum(mm(y1b, ce1[...]), mm(y1b, co1[...]))   # (28*BB, 84)
        r1 = jnp.maximum(c1[0:27 * BB], c1[BB:28 * BB])          # (27*BB, 84)
        p1 = jnp.concatenate(
            [r1[2 * q * BB:(2 * q + 1) * BB] for q in range(14)],
            axis=0)                                              # (14*BB, 84)

        # ---- conv2: 5 kernel-row matmuls with M = 10*BB ----
        p1b = p1.astype(bf16)
        acc = mm(p1b[0:10 * BB], w2b[0])
        for kh in range(1, 5):
            acc = acc + mm(p1b[kh * BB:(kh + 10) * BB], w2b[kh])
        y2 = jnp.maximum(acc + b2r[...], 0.0)          # (10*BB, 160) f32

        # ---- pool2 ----
        y2b = y2.astype(bf16)
        c2 = jnp.maximum(mm(y2b, ce2[...]), mm(y2b, co2[...]))   # (10*BB, 80)
        r2 = jnp.maximum(c2[0:9 * BB], c2[BB:10 * BB])           # (9*BB, 80)
        p2 = jnp.concatenate(
            [r2[2 * q * BB:(2 * q + 1) * BB] for q in range(5)],
            axis=0)                                              # (5*BB, 80)

        # ---- fc1 (flatten folded into per-h weight chunks), M = BB ----
        p2b = p2.astype(bf16)
        h = mm(p2b[0:BB], wf1[0])
        for hr in range(1, 5):
            h = h + mm(p2b[hr * BB:(hr + 1) * BB], wf1[hr])      # (BB, 128)
        h1 = jnp.maximum(h + bf1r[...], 0.0).astype(bf16)

        # ---- fc2 / fc3 ----
        h2 = jnp.maximum(mm(h1, wf2[...]) + bf2r[...], 0.0).astype(bf16)
        o_ref[...] = (mm(h2, wf3[...]) + bf3r[...]).astype(o_ref.dtype)

    return kernel


def _pick_block_batch(B, block_batch):
    if block_batch is not None:
        BB = block_batch
    else:
        BB = 32
        # Keep at least 2 grid steps when the batch allows (v7x: use both TCs).
        while BB > 8 and -(-B // BB) < 2:
            BB //= 2
    return max(8, (BB // 8) * 8)        # multiple of 8: aligned sublane slices


def net_forward(x_nchw, prep, *, block_batch=None):
    B, C, H, W = x_nchw.shape
    assert (C, H, W) == (3, 32, 32), "Net expects (B, 3, 32, 32) input"
    BB = _pick_block_batch(B, block_batch)
    G = -(-B // BB)
    Bpad = G * BB

    # NCHW -> per-group slab (G, 32*BB, 96): rows ordered (spatial_row, image)
    # so conv kernel-row shifts are aligned contiguous slices; lanes are the
    # interleaved (width, channel) layout.  Pure wrapper-side layout plumbing.
    x = jnp.transpose(x_nchw, (0, 2, 3, 1)).reshape(B, 32, 96)
    if Bpad != B:
        x = jnp.pad(x, ((0, Bpad - B), (0, 0), (0, 0)))
    x = (x.reshape(G, BB, 32, 96).transpose(0, 2, 1, 3)
          .reshape(G, 32 * BB, 96).astype(jnp.bfloat16))

    def const_spec(a):
        return pl.BlockSpec(a.shape, lambda i, _n=a.ndim: (0,) * _n)

    in_specs = [pl.BlockSpec((1, 32 * BB, 96), lambda i: (i, 0, 0))]
    in_specs += [const_spec(a) for a in prep]

    flops_per_img = 2 * (5 * 28 * 96 * 168 + 2 * 28 * 168 * 84
                         + 5 * 10 * 84 * 160 + 2 * 10 * 160 * 80
                         + 5 * 80 * 128 + 2 * 128 * 128)
    bytes_accessed = (int(x.size) * 2
                      + sum(int(np.prod(a.shape)) * a.dtype.itemsize
                            for a in prep)
                      + Bpad * 128 * 4)

    out = pl.pallas_call(
        _make_kernel(BB),
        out_shape=jax.ShapeDtypeStruct((Bpad, 128), jnp.float32),
        grid=(G,),
        in_specs=in_specs,
        out_specs=pl.BlockSpec((BB, 128), lambda i: (i, 0)),
        compiler_params=pltpu.CompilerParams(dimension_semantics=("parallel",)),
        cost_estimate=pl.CostEstimate(flops=int(flops_per_img) * Bpad,
                                      transcendentals=0,
                                      bytes_accessed=int(bytes_accessed)),
    )(x, *prep)

    return out[:B, :10]


# ----------------------------------------------------------------------------
# Pure-JAX reference (f32, HIGHEST precision) for the correctness check.
# ----------------------------------------------------------------------------
def reference_forward(x_nchw, params):
    (wc1, bc1, wc2, bc2, w1, b1, w2, b2, w3, b3) = params
    hp = jax.lax.Precision.HIGHEST

    def conv(x, w, b):
        y = jax.lax.conv_general_dilated(
            x, w, window_strides=(1, 1), padding="VALID",
            dimension_numbers=("NCHW", "HWIO", "NCHW"), precision=hp)
        return jnp.maximum(y + b.reshape(1, -1, 1, 1), 0.0)

    def pool(y):
        return jax.lax.reduce_window(y, -jnp.inf, jax.lax.max,
                                     (1, 1, 2, 2), (1, 1, 2, 2), "VALID")

    y = pool(conv(x_nchw, wc1, bc1))
    y = pool(conv(y, wc2, bc2))
    y = y.reshape(y.shape[0], -1)                     # NCHW flatten (c, h, w)
    h = jnp.maximum(jnp.dot(y, w1, precision=hp) + b1, 0.0)
    h = jnp.maximum(jnp.dot(h, w2, precision=hp) + b2, 0.0)
    return jnp.dot(h, w3, precision=hp) + b3


if __name__ == "__main__":
    B = 2
    key = jax.random.PRNGKey(0)
    ks = jax.random.split(key, 11)

    def uinit(k, shape, fan_in):
        bound = 1.0 / (fan_in ** 0.5)
        return jax.random.uniform(k, shape, jnp.float32, -bound, bound)

    # Conv weights stored HWIO, fc weights (in_features, out_features).
    wc1 = uinit(ks[1], (5, 5, 3, 6), 3 * 5 * 5);   bc1 = uinit(ks[2], (6,), 3 * 5 * 5)
    wc2 = uinit(ks[3], (5, 5, 6, 16), 6 * 5 * 5);  bc2 = uinit(ks[4], (16,), 6 * 5 * 5)
    w1 = uinit(ks[5], (400, 120), 400);            b1 = uinit(ks[6], (120,), 400)
    w2 = uinit(ks[7], (120, 84), 120);             b2 = uinit(ks[8], (84,), 120)
    w3 = uinit(ks[9], (84, 10), 84);               b3 = uinit(ks[10], (10,), 84)
    params = (wc1, bc1, wc2, bc2, w1, b1, w2, b2, w3, b3)

    # 16*5*5 = 400 flatten implies 32x32 spatial input (CIFAR-sized).
    x = jax.random.normal(ks[0], (B, 3, 32, 32), jnp.float32)

    prep = prepare_params(params)                  # one-time host-side prep
    out = jax.block_until_ready(jax.jit(net_forward)(x, prep))
    assert out.shape == (B, 10) and out.dtype == jnp.float32

    ref = jax.block_until_ready(reference_forward(x, params))
    # bf16 matmul operands (f32 accumulation) -> loosened tolerance.
    assert bool(jnp.allclose(out, ref, rtol=2e-2, atol=2e-2)), \
        "kernel/reference mismatch"

    print("KERNEL_OK")
</pallas_src>

<mosaic_0001>
module attributes {stable_mosaic.version = 11 : i64} {
  func.func @kernel(%arg0: i32, %arg1: memref<1x256x96xbf16, #tpu.memory_space<vmem>>, %arg2: memref<5x96x168xbf16, #tpu.memory_space<vmem>>, %arg3: memref<1x168xf32, #tpu.memory_space<vmem>>, %arg4: memref<168x84xbf16, #tpu.memory_space<vmem>>, %arg5: memref<168x84xbf16, #tpu.memory_space<vmem>>, %arg6: memref<5x84x160xbf16, #tpu.memory_space<vmem>>, %arg7: memref<1x160xf32, #tpu.memory_space<vmem>>, %arg8: memref<160x80xbf16, #tpu.memory_space<vmem>>, %arg9: memref<160x80xbf16, #tpu.memory_space<vmem>>, %arg10: memref<5x80x128xbf16, #tpu.memory_space<vmem>>, %arg11: memref<1x128xf32, #tpu.memory_space<vmem>>, %arg12: memref<128x128xbf16, #tpu.memory_space<vmem>>, %arg13: memref<1x128xf32, #tpu.memory_space<vmem>>, %arg14: memref<128x128xbf16, #tpu.memory_space<vmem>>, %arg15: memref<1x128xf32, #tpu.memory_space<vmem>>, %arg16: memref<8x128xf32, #tpu.memory_space<vmem>>) attributes {dimension_semantics = [#tpu.dimension_semantics<parallel>], iteration_bounds = array<i64: 1>, scalar_prefetch = 0 : i64, scratch_operands = 0 : i64, tpu.core_type = #tpu.core_type<tc>, window_params = [{transform_indices = @transform_0, window_bounds = array<i64: 1, 256, 96>}, {pipeline_mode = #tpu.pipeline_mode<synchronous>, transform_indices = @transform_1, window_bounds = array<i64: 5, 96, 168>}, {pipeline_mode = #tpu.pipeline_mode<synchronous>, transform_indices = @transform_2, window_bounds = array<i64: 1, 168>}, {pipeline_mode = #tpu.pipeline_mode<synchronous>, transform_indices = @transform_3, window_bounds = array<i64: 168, 84>}, {pipeline_mode = #tpu.pipeline_mode<synchronous>, transform_indices = @transform_4, window_bounds = array<i64: 168, 84>}, {pipeline_mode = #tpu.pipeline_mode<synchronous>, transform_indices = @transform_5, window_bounds = array<i64: 5, 84, 160>}, {pipeline_mode = #tpu.pipeline_mode<synchronous>, transform_indices = @transform_6, window_bounds = array<i64: 1, 160>}, {pipeline_mode = #tpu.pipeline_mode<synchronous>, transform_indices = @transform_7, window_bounds = array<i64: 160, 80>}, {pipeline_mode = #tpu.pipeline_mode<synchronous>, transform_indices = @transform_8, window_bounds = array<i64: 160, 80>}, {pipeline_mode = #tpu.pipeline_mode<synchronous>, transform_indices = @transform_9, window_bounds = array<i64: 5, 80, 128>}, {pipeline_mode = #tpu.pipeline_mode<synchronous>, transform_indices = @transform_10, window_bounds = array<i64: 1, 128>}, {pipeline_mode = #tpu.pipeline_mode<synchronous>, transform_indices = @transform_11, window_bounds = array<i64: 128, 128>}, {pipeline_mode = #tpu.pipeline_mode<synchronous>, transform_indices = @transform_12, window_bounds = array<i64: 1, 128>}, {pipeline_mode = #tpu.pipeline_mode<synchronous>, transform_indices = @transform_13, window_bounds = array<i64: 128, 128>}, {pipeline_mode = #tpu.pipeline_mode<synchronous>, transform_indices = @transform_14, window_bounds = array<i64: 1, 128>}, {transform_indices = @transform_15, window_bounds = array<i64: 8, 128>}]} {
    %c0 = arith.constant 0 : index
    %c0_0 = arith.constant 0 : index
    %c0_1 = arith.constant 0 : index
    %0 = vector.load %arg1[%c0, %c0_0, %c0_1] : memref<1x256x96xbf16, #tpu.memory_space<vmem>>, vector<1x256x96xbf16>
    %1 = vector.shape_cast %0 : vector<1x256x96xbf16> to vector<256x96xbf16>
    %2 = vector.extract_strided_slice %1 {offsets = [0, 0], sizes = [224, 96], strides = [1, 1]} : vector<256x96xbf16> to vector<224x96xbf16>
    %c0_2 = arith.constant 0 : index
    %c0_3 = arith.constant 0 : index
    %c0_4 = arith.constant 0 : index
    %3 = vector.load %arg2[%c0_2, %c0_3, %c0_4] : memref<5x96x168xbf16, #tpu.memory_space<vmem>>, vector<1x96x168xbf16>
    %4 = vector.shape_cast %3 : vector<1x96x168xbf16> to vector<96x168xbf16>
    %cst = arith.constant dense<0.000000e+00> : vector<224x168xf32>
    %5 = tpu.matmul %2, %4, %cst {dimension_numbers = #tpu.dot_dimension_numbers<[1], [0], [0], [1], [0, 0, 1, 1], [], []>} : vector<224x96xbf16>, vector<96x168xbf16>, vector<224x168xf32> -> vector<224x168xf32>
    %6 = vector.extract_strided_slice %1 {offsets = [8, 0], sizes = [224, 96], strides = [1, 1]} : vector<256x96xbf16> to vector<224x96xbf16>
    %c1 = arith.constant 1 : index
    %c0_5 = arith.constant 0 : index
    %c0_6 = arith.constant 0 : index
    %7 = vector.load %arg2[%c1, %c0_5, %c0_6] : memref<5x96x168xbf16, #tpu.memory_space<vmem>>, vector<1x96x168xbf16>
    %8 = vector.shape_cast %7 : vector<1x96x168xbf16> to vector<96x168xbf16>
    %cst_7 = arith.constant dense<0.000000e+00> : vector<224x168xf32>
    %9 = tpu.matmul %6, %8, %cst_7 {dimension_numbers = #tpu.dot_dimension_numbers<[1], [0], [0], [1], [0, 0, 1, 1], [], []>} : vector<224x96xbf16>, vector<96x168xbf16>, vector<224x168xf32> -> vector<224x168xf32>
    %10 = arith.addf %5, %9 : vector<224x168xf32>
    %11 = vector.extract_strided_slice %1 {offsets = [16, 0], sizes = [224, 96], strides = [1, 1]} : vector<256x96xbf16> to vector<224x96xbf16>
    %c2 = arith.constant 2 : index
    %c0_8 = arith.constant 0 : index
    %c0_9 = arith.constant 0 : index
    %12 = vector.load %arg2[%c2, %c0_8, %c0_9] : memref<5x96x168xbf16, #tpu.memory_space<vmem>>, vector<1x96x168xbf16>
    %13 = vector.shape_cast %12 : vector<1x96x168xbf16> to vector<96x168xbf16>
    %cst_10 = arith.constant dense<0.000000e+00> : vector<224x168xf32>
    %14 = tpu.matmul %11, %13, %cst_10 {dimension_numbers = #tpu.dot_dimension_numbers<[1], [0], [0], [1], [0, 0, 1, 1], [], []>} : vector<224x96xbf16>, vector<96x168xbf16>, vector<224x168xf32> -> vector<224x168xf32>
    %15 = arith.addf %10, %14 : vector<224x168xf32>
    %16 = vector.extract_strided_slice %1 {offsets = [24, 0], sizes = [224, 96], strides = [1, 1]} : vector<256x96xbf16> to vector<224x96xbf16>
    %c3 = arith.constant 3 : index
    %c0_11 = arith.constant 0 : index
    %c0_12 = arith.constant 0 : index
    %17 = vector.load %arg2[%c3, %c0_11, %c0_12] : memref<5x96x168xbf16, #tpu.memory_space<vmem>>, vector<1x96x168xbf16>
    %18 = vector.shape_cast %17 : vector<1x96x168xbf16> to vector<96x168xbf16>
    %cst_13 = arith.constant dense<0.000000e+00> : vector<224x168xf32>
    %19 = tpu.matmul %16, %18, %cst_13 {dimension_numbers = #tpu.dot_dimension_numbers<[1], [0], [0], [1], [0, 0, 1, 1], [], []>} : vector<224x96xbf16>, vector<96x168xbf16>, vector<224x168xf32> -> vector<224x168xf32>
    %20 = arith.addf %15, %19 : vector<224x168xf32>
    %21 = vector.extract_strided_slice %1 {offsets = [32, 0], sizes = [224, 96], strides = [1, 1]} : vector<256x96xbf16> to vector<224x96xbf16>
    %c4 = arith.constant 4 : index
    %c0_14 = arith.constant 0 : index
    %c0_15 = arith.constant 0 : index
    %22 = vector.load %arg2[%c4, %c0_14, %c0_15] : memref<5x96x168xbf16, #tpu.memory_space<vmem>>, vector<1x96x168xbf16>
    %23 = vector.shape_cast %22 : vector<1x96x168xbf16> to vector<96x168xbf16>
    %cst_16 = arith.constant dense<0.000000e+00> : vector<224x168xf32>
    %24 = tpu.matmul %21, %23, %cst_16 {dimension_numbers = #tpu.dot_dimension_numbers<[1], [0], [0], [1], [0, 0, 1, 1], [], []>} : vector<224x96xbf16>, vector<96x168xbf16>, vector<224x168xf32> -> vector<224x168xf32>
    %25 = arith.addf %20, %24 : vector<224x168xf32>
    %c0_17 = arith.constant 0 : index
    %c0_18 = arith.constant 0 : index
    %26 = vector.load %arg3[%c0_17, %c0_18] : memref<1x168xf32, #tpu.memory_space<vmem>>, vector<1x168xf32>
    %27 = vector.broadcast %26 : vector<1x168xf32> to vector<224x168xf32>
    %28 = arith.addf %25, %27 : vector<224x168xf32>
    %cst_19 = arith.constant 0.000000e+00 : f32
    %29 = vector.broadcast %cst_19 : f32 to vector<224x168xf32>
    %30 = arith.maximumf %28, %29 : vector<224x168xf32>
    %31 = arith.truncf %30 : vector<224x168xf32> to vector<224x168xbf16>
    %c0_20 = arith.constant 0 : index
    %c0_21 = arith.constant 0 : index
    %32 = vector.load %arg4[%c0_20, %c0_21] : memref<168x84xbf16, #tpu.memory_space<vmem>>, vector<168x84xbf16>
    %cst_22 = arith.constant dense<0.000000e+00> : vector<224x84xf32>
    %33 = tpu.matmul %31, %32, %cst_22 {dimension_numbers = #tpu.dot_dimension_numbers<[1], [0], [0], [1], [0, 0, 1, 1], [], []>} : vector<224x168xbf16>, vector<168x84xbf16>, vector<224x84xf32> -> vector<224x84xf32>
    %c0_23 = arith.constant 0 : index
    %c0_24 = arith.constant 0 : index
    %34 = vector.load %arg5[%c0_23, %c0_24] : memref<168x84xbf16, #tpu.memory_space<vmem>>, vector<168x84xbf16>
    %cst_25 = arith.constant dense<0.000000e+00> : vector<224x84xf32>
    %35 = tpu.matmul %31, %34, %cst_25 {dimension_numbers = #tpu.dot_dimension_numbers<[1], [0], [0], [1], [0, 0, 1, 1], [], []>} : vector<224x168xbf16>, vector<168x84xbf16>, vector<224x84xf32> -> vector<224x84xf32>
    %36 = arith.maximumf %33, %35 : vector<224x84xf32>
    %37 = vector.extract_strided_slice %36 {offsets = [0, 0], sizes = [216, 84], strides = [1, 1]} : vector<224x84xf32> to vector<216x84xf32>
    %38 = vector.extract_strided_slice %36 {offsets = [8, 0], sizes = [216, 84], strides = [1, 1]} : vector<224x84xf32> to vector<216x84xf32>
    %39 = arith.maximumf %37, %38 : vector<216x84xf32>
    %40 = vector.extract_strided_slice %39 {offsets = [0, 0], sizes = [8, 84], strides = [1, 1]} : vector<216x84xf32> to vector<8x84xf32>
    %41 = vector.extract_strided_slice %39 {offsets = [16, 0], sizes = [8, 84], strides = [1, 1]} : vector<216x84xf32> to vector<8x84xf32>
    %42 = vector.extract_strided_slice %39 {offsets = [32, 0], sizes = [8, 84], strides = [1, 1]} : vector<216x84xf32> to vector<8x84xf32>
    %43 = vector.extract_strided_slice %39 {offsets = [48, 0], sizes = [8, 84], strides = [1, 1]} : vector<216x84xf32> to vector<8x84xf32>
    %44 = vector.extract_strided_slice %39 {offsets = [64, 0], sizes = [8, 84], strides = [1, 1]} : vector<216x84xf32> to vector<8x84xf32>
    %45 = vector.extract_strided_slice %39 {offsets = [80, 0], sizes = [8, 84], strides = [1, 1]} : vector<216x84xf32> to vector<8x84xf32>
    %46 = vector.extract_strided_slice %39 {offsets = [96, 0], sizes = [8, 84], strides = [1, 1]} : vector<216x84xf32> to vector<8x84xf32>
    %47 = vector.extract_strided_slice %39 {offsets = [112, 0], sizes = [8, 84], strides = [1, 1]} : vector<216x84xf32> to vector<8x84xf32>
    %48 = vector.extract_strided_slice %39 {offsets = [128, 0], sizes = [8, 84], strides = [1, 1]} : vector<216x84xf32> to vector<8x84xf32>
    %49 = vector.extract_strided_slice %39 {offsets = [144, 0], sizes = [8, 84], strides = [1, 1]} : vector<216x84xf32> to vector<8x84xf32>
    %50 = vector.extract_strided_slice %39 {offsets = [160, 0], sizes = [8, 84], strides = [1, 1]} : vector<216x84xf32> to vector<8x84xf32>
    %51 = vector.extract_strided_slice %39 {offsets = [176, 0], sizes = [8, 84], strides = [1, 1]} : vector<216x84xf32> to vector<8x84xf32>
    %52 = vector.extract_strided_slice %39 {offsets = [192, 0], sizes = [8, 84], strides = [1, 1]} : vector<216x84xf32> to vector<8x84xf32>
    %53 = vector.extract_strided_slice %39 {offsets = [208, 0], sizes = [8, 84], strides = [1, 1]} : vector<216x84xf32> to vector<8x84xf32>
    %54 = tpu.concatenate %40, %41, %42, %43, %44, %45, %46, %47, %48, %49, %50, %51, %52, %53 in 0 : vector<8x84xf32>, vector<8x84xf32>, vector<8x84xf32>, vector<8x84xf32>, vector<8x84xf32>, vector<8x84xf32>, vector<8x84xf32>, vector<8x84xf32>, vector<8x84xf32>, vector<8x84xf32>, vector<8x84xf32>, vector<8x84xf32>, vector<8x84xf32>, vector<8x84xf32> -> vector<112x84xf32>
    %55 = arith.truncf %54 : vector<112x84xf32> to vector<112x84xbf16>
    %56 = vector.extract_strided_slice %55 {offsets = [0, 0], sizes = [80, 84], strides = [1, 1]} : vector<112x84xbf16> to vector<80x84xbf16>
    %c0_26 = arith.constant 0 : index
    %c0_27 = arith.constant 0 : index
    %c0_28 = arith.constant 0 : index
    %57 = vector.load %arg6[%c0_26, %c0_27, %c0_28] : memref<5x84x160xbf16, #tpu.memory_space<vmem>>, vector<1x84x160xbf16>
    %58 = vector.shape_cast %57 : vector<1x84x160xbf16> to vector<84x160xbf16>
    %cst_29 = arith.constant dense<0.000000e+00> : vector<80x160xf32>
    %59 = tpu.matmul %56, %58, %cst_29 {dimension_numbers = #tpu.dot_dimension_numbers<[1], [0], [0], [1], [0, 0, 1, 1], [], []>} : vector<80x84xbf16>, vector<84x160xbf16>, vector<80x160xf32> -> vector<80x160xf32>
    %60 = vector.extract_strided_slice %55 {offsets = [8, 0], sizes = [80, 84], strides = [1, 1]} : vector<112x84xbf16> to vector<80x84xbf16>
    %c1_30 = arith.constant 1 : index
    %c0_31 = arith.constant 0 : index
    %c0_32 = arith.constant 0 : index
    %61 = vector.load %arg6[%c1_30, %c0_31, %c0_32] : memref<5x84x160xbf16, #tpu.memory_space<vmem>>, vector<1x84x160xbf16>
    %62 = vector.shape_cast %61 : vector<1x84x160xbf16> to vector<84x160xbf16>
    %cst_33 = arith.constant dense<0.000000e+00> : vector<80x160xf32>
    %63 = tpu.matmul %60, %62, %cst_33 {dimension_numbers = #tpu.dot_dimension_numbers<[1], [0], [0], [1], [0, 0, 1, 1], [], []>} : vector<80x84xbf16>, vector<84x160xbf16>, vector<80x160xf32> -> vector<80x160xf32>
    %64 = arith.addf %59, %63 : vector<80x160xf32>
    %65 = vector.extract_strided_slice %55 {offsets = [16, 0], sizes = [80, 84], strides = [1, 1]} : vector<112x84xbf16> to vector<80x84xbf16>
    %c2_34 = arith.constant 2 : index
    %c0_35 = arith.constant 0 : index
    %c0_36 = arith.constant 0 : index
    %66 = vector.load %arg6[%c2_34, %c0_35, %c0_36] : memref<5x84x160xbf16, #tpu.memory_space<vmem>>, vector<1x84x160xbf16>
    %67 = vector.shape_cast %66 : vector<1x84x160xbf16> to vector<84x160xbf16>
    %cst_37 = arith.constant dense<0.000000e+00> : vector<80x160xf32>
    %68 = tpu.matmul %65, %67, %cst_37 {dimension_numbers = #tpu.dot_dimension_numbers<[1], [0], [0], [1], [0, 0, 1, 1], [], []>} : vector<80x84xbf16>, vector<84x160xbf16>, vector<80x160xf32> -> vector<80x160xf32>
    %69 = arith.addf %64, %68 : vector<80x160xf32>
    %70 = vector.extract_strided_slice %55 {offsets = [24, 0], sizes = [80, 84], strides = [1, 1]} : vector<112x84xbf16> to vector<80x84xbf16>
    %c3_38 = arith.constant 3 : index
    %c0_39 = arith.constant 0 : index
    %c0_40 = arith.constant 0 : index
    %71 = vector.load %arg6[%c3_38, %c0_39, %c0_40] : memref<5x84x160xbf16, #tpu.memory_space<vmem>>, vector<1x84x160xbf16>
    %72 = vector.shape_cast %71 : vector<1x84x160xbf16> to vector<84x160xbf16>
    %cst_41 = arith.constant dense<0.000000e+00> : vector<80x160xf32>
    %73 = tpu.matmul %70, %72, %cst_41 {dimension_numbers = #tpu.dot_dimension_numbers<[1], [0], [0], [1], [0, 0, 1, 1], [], []>} : vector<80x84xbf16>, vector<84x160xbf16>, vector<80x160xf32> -> vector<80x160xf32>
    %74 = arith.addf %69, %73 : vector<80x160xf32>
    %75 = vector.extract_strided_slice %55 {offsets = [32, 0], sizes = [80, 84], strides = [1, 1]} : vector<112x84xbf16> to vector<80x84xbf16>
    %c4_42 = arith.constant 4 : index
    %c0_43 = arith.constant 0 : index
    %c0_44 = arith.constant 0 : index
    %76 = vector.load %arg6[%c4_42, %c0_43, %c0_44] : memref<5x84x160xbf16, #tpu.memory_space<vmem>>, vector<1x84x160xbf16>
    %77 = vector.shape_cast %76 : vector<1x84x160xbf16> to vector<84x160xbf16>
    %cst_45 = arith.constant dense<0.000000e+00> : vector<80x160xf32>
    %78 = tpu.matmul %75, %77, %cst_45 {dimension_numbers = #tpu.dot_dimension_numbers<[1], [0], [0], [1], [0, 0, 1, 1], [], []>} : vector<80x84xbf16>, vector<84x160xbf16>, vector<80x160xf32> -> vector<80x160xf32>
    %79 = arith.addf %74, %78 : vector<80x160xf32>
    %c0_46 = arith.constant 0 : index
    %c0_47 = arith.constant 0 : index
    %80 = vector.load %arg7[%c0_46, %c0_47] : memref<1x160xf32, #tpu.memory_space<vmem>>, vector<1x160xf32>
    %81 = vector.broadcast %80 : vector<1x160xf32> to vector<80x160xf32>
    %82 = arith.addf %79, %81 : vector<80x160xf32>
    %cst_48 = arith.constant 0.000000e+00 : f32
    %83 = vector.broadcast %cst_48 : f32 to vector<80x160xf32>
    %84 = arith.maximumf %82, %83 : vector<80x160xf32>
    %85 = arith.truncf %84 : vector<80x160xf32> to vector<80x160xbf16>
    %c0_49 = arith.constant 0 : index
    %c0_50 = arith.constant 0 : index
    %86 = vector.load %arg8[%c0_49, %c0_50] : memref<160x80xbf16, #tpu.memory_space<vmem>>, vector<160x80xbf16>
    %cst_51 = arith.constant dense<0.000000e+00> : vector<80x80xf32>
    %87 = tpu.matmul %85, %86, %cst_51 {dimension_numbers = #tpu.dot_dimension_numbers<[1], [0], [0], [1], [0, 0, 1, 1], [], []>} : vector<80x160xbf16>, vector<160x80xbf16>, vector<80x80xf32> -> vector<80x80xf32>
    %c0_52 = arith.constant 0 : index
    %c0_53 = arith.constant 0 : index
    %88 = vector.load %arg9[%c0_52, %c0_53] : memref<160x80xbf16, #tpu.memory_space<vmem>>, vector<160x80xbf16>
    %cst_54 = arith.constant dense<0.000000e+00> : vector<80x80xf32>
    %89 = tpu.matmul %85, %88, %cst_54 {dimension_numbers = #tpu.dot_dimension_numbers<[1], [0], [0], [1], [0, 0, 1, 1], [], []>} : vector<80x160xbf16>, vector<160x80xbf16>, vector<80x80xf32> -> vector<80x80xf32>
    %90 = arith.maximumf %87, %89 : vector<80x80xf32>
    %91 = vector.extract_strided_slice %90 {offsets = [0, 0], sizes = [72, 80], strides = [1, 1]} : vector<80x80xf32> to vector<72x80xf32>
    %92 = vector.extract_strided_slice %90 {offsets = [8, 0], sizes = [72, 80], strides = [1, 1]} : vector<80x80xf32> to vector<72x80xf32>
    %93 = arith.maximumf %91, %92 : vector<72x80xf32>
    %94 = vector.extract_strided_slice %93 {offsets = [0, 0], sizes = [8, 80], strides = [1, 1]} : vector<72x80xf32> to vector<8x80xf32>
    %95 = vector.extract_strided_slice %93 {offsets = [16, 0], sizes = [8, 80], strides = [1, 1]} : vector<72x80xf32> to vector<8x80xf32>
    %96 = vector.extract_strided_slice %93 {offsets = [32, 0], sizes = [8, 80], strides = [1, 1]} : vector<72x80xf32> to vector<8x80xf32>
    %97 = vector.extract_strided_slice %93 {offsets = [48, 0], sizes = [8, 80], strides = [1, 1]} : vector<72x80xf32> to vector<8x80xf32>
    %98 = vector.extract_strided_slice %93 {offsets = [64, 0], sizes = [8, 80], strides = [1, 1]} : vector<72x80xf32> to vector<8x80xf32>
    %99 = tpu.concatenate %94, %95, %96, %97, %98 in 0 : vector<8x80xf32>, vector<8x80xf32>, vector<8x80xf32>, vector<8x80xf32>, vector<8x80xf32> -> vector<40x80xf32>
    %100 = arith.truncf %99 : vector<40x80xf32> to vector<40x80xbf16>
    %101 = vector.extract_strided_slice %100 {offsets = [0, 0], sizes = [8, 80], strides = [1, 1]} : vector<40x80xbf16> to vector<8x80xbf16>
    %c0_55 = arith.constant 0 : index
    %c0_56 = arith.constant 0 : index
    %c0_57 = arith.constant 0 : index
    %102 = vector.load %arg10[%c0_55, %c0_56, %c0_57] : memref<5x80x128xbf16, #tpu.memory_space<vmem>>, vector<1x80x128xbf16>
    %103 = vector.shape_cast %102 : vector<1x80x128xbf16> to vector<80x128xbf16>
    %cst_58 = arith.constant dense<0.000000e+00> : vector<8x128xf32>
    %104 = tpu.matmul %101, %103, %cst_58 {dimension_numbers = #tpu.dot_dimension_numbers<[1], [0], [0], [1], [0, 0, 1, 1], [], []>} : vector<8x80xbf16>, vector<80x128xbf16>, vector<8x128xf32> -> vector<8x128xf32>
    %105 = vector.extract_strided_slice %100 {offsets = [8, 0], sizes = [8, 80], strides = [1, 1]} : vector<40x80xbf16> to vector<8x80xbf16>
    %c1_59 = arith.constant 1 : index
    %c0_60 = arith.constant 0 : index
    %c0_61 = arith.constant 0 : index
    %106 = vector.load %arg10[%c1_59, %c0_60, %c0_61] : memref<5x80x128xbf16, #tpu.memory_space<vmem>>, vector<1x80x128xbf16>
    %107 = vector.shape_cast %106 : vector<1x80x128xbf16> to vector<80x128xbf16>
    %cst_62 = arith.constant dense<0.000000e+00> : vector<8x128xf32>
    %108 = tpu.matmul %105, %107, %cst_62 {dimension_numbers = #tpu.dot_dimension_numbers<[1], [0], [0], [1], [0, 0, 1, 1], [], []>} : vector<8x80xbf16>, vector<80x128xbf16>, vector<8x128xf32> -> vector<8x128xf32>
    %109 = arith.addf %104, %108 : vector<8x128xf32>
    %110 = vector.extract_strided_slice %100 {offsets = [16, 0], sizes = [8, 80], strides = [1, 1]} : vector<40x80xbf16> to vector<8x80xbf16>
    %c2_63 = arith.constant 2 : index
    %c0_64 = arith.constant 0 : index
    %c0_65 = arith.constant 0 : index
    %111 = vector.load %arg10[%c2_63, %c0_64, %c0_65] : memref<5x80x128xbf16, #tpu.memory_space<vmem>>, vector<1x80x128xbf16>
    %112 = vector.shape_cast %111 : vector<1x80x128xbf16> to vector<80x128xbf16>
    %cst_66 = arith.constant dense<0.000000e+00> : vector<8x128xf32>
    %113 = tpu.matmul %110, %112, %cst_66 {dimension_numbers = #tpu.dot_dimension_numbers<[1], [0], [0], [1], [0, 0, 1, 1], [], []>} : vector<8x80xbf16>, vector<80x128xbf16>, vector<8x128xf32> -> vector<8x128xf32>
    %114 = arith.addf %109, %113 : vector<8x128xf32>
    %115 = vector.extract_strided_slice %100 {offsets = [24, 0], sizes = [8, 80], strides = [1, 1]} : vector<40x80xbf16> to vector<8x80xbf16>
    %c3_67 = arith.constant 3 : index
    %c0_68 = arith.constant 0 : index
    %c0_69 = arith.constant 0 : index
    %116 = vector.load %arg10[%c3_67, %c0_68, %c0_69] : memref<5x80x128xbf16, #tpu.memory_space<vmem>>, vector<1x80x128xbf16>
    %117 = vector.shape_cast %116 : vector<1x80x128xbf16> to vector<80x128xbf16>
    %cst_70 = arith.constant dense<0.000000e+00> : vector<8x128xf32>
    %118 = tpu.matmul %115, %117, %cst_70 {dimension_numbers = #tpu.dot_dimension_numbers<[1], [0], [0], [1], [0, 0, 1, 1], [], []>} : vector<8x80xbf16>, vector<80x128xbf16>, vector<8x128xf32> -> vector<8x128xf32>
    %119 = arith.addf %114, %118 : vector<8x128xf32>
    %120 = vector.extract_strided_slice %100 {offsets = [32, 0], sizes = [8, 80], strides = [1, 1]} : vector<40x80xbf16> to vector<8x80xbf16>
    %c4_71 = arith.constant 4 : index
    %c0_72 = arith.constant 0 : index
    %c0_73 = arith.constant 0 : index
    %121 = vector.load %arg10[%c4_71, %c0_72, %c0_73] : memref<5x80x128xbf16, #tpu.memory_space<vmem>>, vector<1x80x128xbf16>
    %122 = vector.shape_cast %121 : vector<1x80x128xbf16> to vector<80x128xbf16>
    %cst_74 = arith.constant dense<0.000000e+00> : vector<8x128xf32>
    %123 = tpu.matmul %120, %122, %cst_74 {dimension_numbers = #tpu.dot_dimension_numbers<[1], [0], [0], [1], [0, 0, 1, 1], [], []>} : vector<8x80xbf16>, vector<80x128xbf16>, vector<8x128xf32> -> vector<8x128xf32>
    %124 = arith.addf %119, %123 : vector<8x128xf32>
    %c0_75 = arith.constant 0 : index
    %c0_76 = arith.constant 0 : index
    %125 = vector.load %arg11[%c0_75, %c0_76] : memref<1x128xf32, #tpu.memory_space<vmem>>, vector<1x128xf32>
    %126 = vector.broadcast %125 : vector<1x128xf32> to vector<8x128xf32>
    %127 = arith.addf %124, %126 : vector<8x128xf32>
    %cst_77 = arith.constant 0.000000e+00 : f32
    %128 = vector.broadcast %cst_77 : f32 to vector<8x128xf32>
    %129 = arith.maximumf %127, %128 : vector<8x128xf32>
    %130 = arith.truncf %129 : vector<8x128xf32> to vector<8x128xbf16>
    %c0_78 = arith.constant 0 : index
    %c0_79 = arith.constant 0 : index
    %131 = vector.load %arg12[%c0_78, %c0_79] : memref<128x128xbf16, #tpu.memory_space<vmem>>, vector<128x128xbf16>
    %cst_80 = arith.constant dense<0.000000e+00> : vector<8x128xf32>
    %132 = tpu.matmul %130, %131, %cst_80 {dimension_numbers = #tpu.dot_dimension_numbers<[1], [0], [0], [1], [0, 0, 1, 1], [], []>} : vector<8x128xbf16>, vector<128x128xbf16>, vector<8x128xf32> -> vector<8x128xf32>
    %c0_81 = arith.constant 0 : index
    %c0_82 = arith.constant 0 : index
    %133 = vector.load %arg13[%c0_81, %c0_82] : memref<1x128xf32, #tpu.memory_space<vmem>>, vector<1x128xf32>
    %134 = vector.broadcast %133 : vector<1x128xf32> to vector<8x128xf32>
    %135 = arith.addf %132, %134 : vector<8x128xf32>
    %cst_83 = arith.constant 0.000000e+00 : f32
    %136 = vector.broadcast %cst_83 : f32 to vector<8x128xf32>
    %137 = arith.maximumf %135, %136 : vector<8x128xf32>
    %138 = arith.truncf %137 : vector<8x128xf32> to vector<8x128xbf16>
    %c0_84 = arith.constant 0 : index
    %c0_85 = arith.constant 0 : index
    %139 = vector.load %arg14[%c0_84, %c0_85] : memref<128x128xbf16, #tpu.memory_space<vmem>>, vector<128x128xbf16>
    %cst_86 = arith.constant dense<0.000000e+00> : vector<8x128xf32>
    %140 = tpu.matmul %138, %139, %cst_86 {dimension_numbers = #tpu.dot_dimension_numbers<[1], [0], [0], [1], [0, 0, 1, 1], [], []>} : vector<8x128xbf16>, vector<128x128xbf16>, vector<8x128xf32> -> vector<8x128xf32>
    %c0_87 = arith.constant 0 : index
    %c0_88 = arith.constant 0 : index
    %141 = vector.load %arg15[%c0_87, %c0_88] : memref<1x128xf32, #tpu.memory_space<vmem>>, vector<1x128xf32>
    %142 = vector.broadcast %141 : vector<1x128xf32> to vector<8x128xf32>
    %143 = arith.addf %140, %142 : vector<8x128xf32>
    %c0_89 = arith.constant 0 : index
    %c0_90 = arith.constant 0 : index
    %144 = vector.load %arg16[%c0_89, %c0_90] : memref<8x128xf32, #tpu.memory_space<vmem>>, vector<8x128xf32>
    tpu.vector_store %arg16[%c0_89, %c0_90], %143 {strides = array<i32>} : memref<8x128xf32, #tpu.memory_space<vmem>>, vector<8x128xf32>,
    return
  }
  func.func @transform_0(%arg0: i32) -> (i32, i32, i32) {
    %c0_i32 = arith.constant 0 : i32
    %c0_i32_0 = arith.constant 0 : i32
    %c0_i32_1 = arith.constant 0 : i32
    return %arg0, %c0_i32, %c0_i32_0 : i32, i32, i32
  }
  func.func @transform_1(%arg0: i32) -> (i32, i32, i32) {
    %c0_i32 = arith.constant 0 : i32
    %c0_i32_0 = arith.constant 0 : i32
    %c0_i32_1 = arith.constant 0 : i32
    %c0_i32_2 = arith.constant 0 : i32
    return %c0_i32, %c0_i32_0, %c0_i32_1 : i32, i32, i32
  }
  func.func @transform_2(%arg0: i32) -> (i32, i32) {
    %c0_i32 = arith.constant 0 : i32
    %c0_i32_0 = arith.constant 0 : i32
    %c0_i32_1 = arith.constant 0 : i32
    return %c0_i32, %c0_i32_0 : i32, i32
  }
  func.func @transform_3(%arg0: i32) -> (i32, i32) {
    %c0_i32 = arith.constant 0 : i32
    %c0_i32_0 = arith.constant 0 : i32
    %c0_i32_1 = arith.constant 0 : i32
    return %c0_i32, %c0_i32_0 : i32, i32
  }
  func.func @transform_4(%arg0: i32) -> (i32, i32) {
    %c0_i32 = arith.constant 0 : i32
    %c0_i32_0 = arith.constant 0 : i32
    %c0_i32_1 = arith.constant 0 : i32
    return %c0_i32, %c0_i32_0 : i32, i32
  }
  func.func @transform_5(%arg0: i32) -> (i32, i32, i32) {
    %c0_i32 = arith.constant 0 : i32
    %c0_i32_0 = arith.constant 0 : i32
    %c0_i32_1 = arith.constant 0 : i32
    %c0_i32_2 = arith.constant 0 : i32
    return %c0_i32, %c0_i32_0, %c0_i32_1 : i32, i32, i32
  }
  func.func @transform_6(%arg0: i32) -> (i32, i32) {
    %c0_i32 = arith.constant 0 : i32
    %c0_i32_0 = arith.constant 0 : i32
    %c0_i32_1 = arith.constant 0 : i32
    return %c0_i32, %c0_i32_0 : i32, i32
  }
  func.func @transform_7(%arg0: i32) -> (i32, i32) {
    %c0_i32 = arith.constant 0 : i32
    %c0_i32_0 = arith.constant 0 : i32
    %c0_i32_1 = arith.constant 0 : i32
    return %c0_i32, %c0_i32_0 : i32, i32
  }
  func.func @transform_8(%arg0: i32) -> (i32, i32) {
    %c0_i32 = arith.constant 0 : i32
    %c0_i32_0 = arith.constant 0 : i32
    %c0_i32_1 = arith.constant 0 : i32
    return %c0_i32, %c0_i32_0 : i32, i32
  }
  func.func @transform_9(%arg0: i32) -> (i32, i32, i32) {
    %c0_i32 = arith.constant 0 : i32
    %c0_i32_0 = arith.constant 0 : i32
    %c0_i32_1 = arith.constant 0 : i32
    %c0_i32_2 = arith.constant 0 : i32
    return %c0_i32, %c0_i32_0, %c0_i32_1 : i32, i32, i32
  }
  func.func @transform_10(%arg0: i32) -> (i32, i32) {
    %c0_i32 = arith.constant 0 : i32
    %c0_i32_0 = arith.constant 0 : i32
    %c0_i32_1 = arith.constant 0 : i32
    return %c0_i32, %c0_i32_0 : i32, i32
  }
  func.func @transform_11(%arg0: i32) -> (i32, i32) {
    %c0_i32 = arith.constant 0 : i32
    %c0_i32_0 = arith.constant 0 : i32
    %c0_i32_1 = arith.constant 0 : i32
    return %c0_i32, %c0_i32_0 : i32, i32
  }
  func.func @transform_12(%arg0: i32) -> (i32, i32) {
    %c0_i32 = arith.constant 0 : i32
    %c0_i32_0 = arith.constant 0 : i32
    %c0_i32_1 = arith.constant 0 : i32
    return %c0_i32, %c0_i32_0 : i32, i32
  }
  func.func @transform_13(%arg0: i32) -> (i32, i32) {
    %c0_i32 = arith.constant 0 : i32
    %c0_i32_0 = arith.constant 0 : i32
    %c0_i32_1 = arith.constant 0 : i32
    return %c0_i32, %c0_i32_0 : i32, i32
  }
  func.func @transform_14(%arg0: i32) -> (i32, i32) {
    %c0_i32 = arith.constant 0 : i32
    %c0_i32_0 = arith.constant 0 : i32
    %c0_i32_1 = arith.constant 0 : i32
    return %c0_i32, %c0_i32_0 : i32, i32
  }
  func.func @transform_15(%arg0: i32) -> (i32, i32) {
    %c0_i32 = arith.constant 0 : i32
    %c0_i32_0 = arith.constant 0 : i32
    return %arg0, %c0_i32 : i32, i32
  }
}

</mosaic_0001>

<bundles_post_ra>
// kernel: net_forward.1
= control target key start
LH: loop header
LB: loop body
LE: loop exit
PB: predicated region body
PF: predicated region fallthrough
CT: control target
= control target key end

     0   :  { %v5613_v1 = vmov 0   ;;  %vm238_vm0 = vcmask 785408   ;;  %vm1948_vm1 = vcmask 1043456   ;;  %vm1905_vm2 = vcmask 326656   ;;  %s7257_s1 = inlined_call_operand.vmem [shape: bf16[5,96,168], index: 1, kind: input, shape index: {}]   ;;  %s7258_s0 = inlined_call_operand.vmem [shape: bf16[1,256,96], index: 0, kind: input, shape index: {}]   ;;  %s7259_s3 = inlined_call_operand.vmem [shape: bf16[168,84], index: 3, kind: input, shape index: {}]   ;;  %s7260_s4 = inlined_call_operand.vmem [shape: bf16[168,84], index: 4, kind: input, shape index: {}]   ;;  %s7261_s2 = inlined_call_operand.vmem [shape: f32[1,168], index: 2, kind: input, shape index: {}]   ;;  %s7262_s5 = inlined_call_operand.vmem [shape: bf16[5,84,160], index: 5, kind: input, shape index: {}]   ;;  %s7263_s7 = inlined_call_operand.vmem [shape: bf16[160,80], index: 7, kind: input, shape index: {}]   ;;  %s7264_s8 = inlined_call_operand.vmem [shape: bf16[160,80], index: 8, kind: input, shape index: {}]   ;;  %s7265_s9 = inlined_call_operand.vmem [shape: bf16[5,80,128], index: 9, kind: input, shape index: {}]   ;;  %s7266_s6 = inlined_call_operand.vmem [shape: f32[1,160], index: 6, kind: input, shape index: {}]   ;;  %s7267_s11 = inlined_call_operand.vmem [shape: bf16[128,128], index: 11, kind: input, shape index: {}]   ;;  %s7268_s13 = inlined_call_operand.vmem [shape: bf16[128,128], index: 13, kind: input, shape index: {}]   ;;  %s7269_s10 = inlined_call_operand.vmem [shape: f32[1,128], index: 10, kind: input, shape index: {}]   ;;  %s7270_s12 = inlined_call_operand.vmem [shape: f32[1,128], index: 12, kind: input, shape index: {}]   ;;  %s7271_s14 = inlined_call_operand.vmem [shape: f32[1,128], index: 14, kind: input, shape index: {}]   ;;  %s7272_s15 = inlined_call_operand.vmem [shape: f32[8,128], index: 15, kind: output, shape index: {}]  }
   0x1   :  { %v5324_v0 = vld [vmem:[%s7257_s1 + $0x64] ss:$8 sps:$4 sm:$0xff]   ;;  %313 = vmatprep.mubr.bf16.mxu0 %v5613_v1  ;;  %1952 = vmatprep.subr.bf16.mxu1 %v5613_v1  ;;  %v5326_v2 = vld [vmem:[%s7257_s1 + $0x60] ss:$8 sps:$4 sm:$0xff]   ;;  %v5327_v3 = vld [vmem:[%s7257_s1 + $0x74] ss:$8 sps:$4 sm:$0xff]  }
   0x2   :  { %281 = vmatprep.subr.bf16.mxu0 %v5324_v0  ;;  %v5329_v4 = vld [vmem:[%s7257_s1 + $0x70] ss:$8 sps:$4 sm:$0xff]   ;;  %v5330_v5 = vld [vmem:[%s7257_s1 + $0x84] ss:$8 sps:$4 sm:$0xff]   ;;  %v5332_v6 = vld [vmem:[%s7257_s1 + $0x80] ss:$8 sps:$4 sm:$0xff]  }
   0x3   :  { %282 = vmatpush1.bf16.msra.mxu0 %v5326_v2  ;;  %v5333_v7 = vld [vmem:[%s7257_s1 + $0x94] ss:$8 sps:$4 sm:$0xff]   ;;  %v53_v8 = vld [vmem:[%s7258_s0 + $0x8] sm:$0xf]  ;;  %v54_v9 = vld [vmem:[%s7258_s0 + $0xc] sm:$0xf] }
   0x4   :  { %283 = vmatprep.subr.bf16.mxu0 %v5327_v3  ;;  %v5335_v10 = vld [vmem:[%s7257_s1 + $0x90] ss:$8 sps:$4 sm:$0xff]   ;;  %v5728_v11 = vcombine.low %v53_v8, %v54_v9  ;;  %v5336_v12 = vld [vmem:[%s7257_s1 + $0xa4] ss:$8 sps:$4 sm:$0xff]   ;;  %v5338_v13 = vld [vmem:[%s7257_s1 + $0xa0] ss:$8 sps:$4 sm:$0xff]  }
   0x5   :  { %v5339_v14 = vld [vmem:[%s7257_s1 + $0xb4] ss:$8 sps:$4 sm:$0xff]   ;;  %v55_v15 = vld [vmem:[%s7258_s0 + $0x10] sm:$0xf]  ;;  %v5751_v18 = vld [vmem:[%s7258_s0 + $0x4] sm:$0xf] }
   0x6   :  { %v56_v16 = vld [vmem:[%s7258_s0 + $0x14] sm:$0xf]  ;;  %v5341_v17 = vld [vmem:[%s7257_s1 + $0xb0] ss:$8 sps:$4 sm:$0xff]   ;;  %v5346_v20 = vld [vmem:[%s7257_s1 + $0x4] ss:$8 sps:$4 sm:$0xff]   ;;  %v4359_v21 = vcombine.low %v5751_v18, %v53_v8  ;;  %v5784_v30 = vcombine.low %v54_v9, %v55_v15 }
   0x7   :  { %284 = vmatpush1.bf16.msra.mxu0 %v5329_v4  ;;  %v5753_v19 = vcombine.low %v55_v15, %v56_v16  ;;  %v5344_v22 = vld [vmem:[%s7257_s1] ss:$8 sps:$4 sm:$0xff]   ;;  %v5351_v23 = vld [vmem:[%s7257_s1 + $0x14] ss:$8 sps:$4 sm:$0xff]   ;;  %v57_v24 = vld [vmem:[%s7258_s0 + $0x18] sm:$0xf] }
   0x8   :  { %285 = vmatprep.subr.bf16.mxu0 %v5330_v5  ;;  %v58_v25 = vld [vmem:[%s7258_s0 + $0x1c] sm:$0xf]  ;;  %v5349_v26 = vld [vmem:[%s7257_s1 + $0x10] ss:$8 sps:$4 sm:$0xff]   ;;  %v5356_v28 = vld [vmem:[%s7257_s1 + $0x24] ss:$8 sps:$4 sm:$0xff]   ;;  %v5806_v37 = vcombine.low %v56_v16, %v57_v24 }
   0x9   :  { %v5776_v27 = vcombine.low %v57_v24, %v58_v25  ;;  %v5354_v29 = vld [vmem:[%s7257_s1 + $0x20] ss:$8 sps:$4 sm:$0xff]   ;;  %v5362_v31 = vld [vmem:[%s7257_s1 + $0x34] ss:$8 sps:$4 sm:$0xff]   ;;  %v60_v33 = vld [vmem:[%s7258_s0 + $0x24] sm:$0xf] }
   0xa   :  { %v59_v32 = vld [vmem:[%s7258_s0 + $0x20] sm:$0xf]  ;;  %v5360_v34 = vld [vmem:[%s7257_s1 + $0x30] ss:$8 sps:$4 sm:$0xff]   ;;  %v5367_v35 = vld [vmem:[%s7257_s1 + $0x44] ss:$8 sps:$4 sm:$0xff]  }
   0xb   :  { %286 = vmatpush1.bf16.msra.mxu0 %v5332_v6  ;;  %v5804_v36 = vcombine.low %v59_v32, %v60_v33  ;;  %v5365_v38 = vld [vmem:[%s7257_s1 + $0x40] ss:$8 sps:$4 sm:$0xff]   ;;  %v5372_v39 = vld [vmem:[%s7257_s1 + $0x54] ss:$8 sps:$4 sm:$0xff]   ;;  %v62_v41 = vld [vmem:[%s7258_s0 + $0x2c] sm:$0xf]  ;;  %v5831_v45 = vcombine.low %v58_v25, %v59_v32 }
   0xc   :  { %287 = vmatprep.subr.bf16.mxu0 %v5333_v7  ;;  %v61_v40 = vld [vmem:[%s7258_s0 + $0x28] sm:$0xf]  ;;  %v5370_v42 = vld [vmem:[%s7257_s1 + $0x50] ss:$8 sps:$4 sm:$0xff]   ;;  %v5377_v44 = vld [vmem:[%s7257_s1 + $0xc4] ss:$8 sps:$4 sm:$0xff]  }
   0xd   :  { %v5826_v43 = vcombine.low %v61_v40, %v62_v41  ;;  %v63_v46 = vld [vmem:[%s7258_s0 + $0x30] sm:$0xf]  ;;  %v64_v47 = vld [vmem:[%s7258_s0 + $0x34] sm:$0xf]  ;;  %v5844_v49 = vcombine.low %v60_v33, %v61_v40  ;;  %v65_v50 = vld [vmem:[%s7258_s0 + $0x38] sm:$0xf] }
   0xe   :  { %v5842_v48 = vcombine.low %v63_v46, %v64_v47  ;;  %v66_v51 = vld [vmem:[%s7258_s0 + $0x3c] sm:$0xf]  ;;  %v5857_v53 = vcombine.low %v62_v41, %v63_v46  ;;  %v67_v54 = vld [vmem:[%s7258_s0 + $0x40] sm:$0xf]  ;;  %v68_v55 = vld [vmem:[%s7258_s0 + $0x44] sm:$0xf]  ;;  %v5870_v57 = vcombine.low %v64_v47, %v65_v50 }
   0xf   :  { %288 = vmatpush1.bf16.msra.mxu0 %v5335_v10  ;;  %v5855_v52 = vcombine.low %v65_v50, %v66_v51  ;;  %v5868_v56 = vcombine.low %v67_v54, %v68_v55  ;;  %v69_v58 = vld [vmem:[%s7258_s0 + $0x48] sm:$0xf]  ;;  %v70_v59 = vld [vmem:[%s7258_s0 + $0x4c] sm:$0xf]  ;;  %v5883_v61 = vcombine.low %v66_v51, %v67_v54  ;;  %v71_v62 = vld [vmem:[%s7258_s0 + $0x50] sm:$0xf] }
  0x10   :  { %289 = vmatprep.subr.bf16.mxu0 %v5336_v12  ;;  %v5881_v60 = vcombine.low %v69_v58, %v70_v59  ;;  %v72_v63 = vld [vmem:[%s7258_s0 + $0x54] sm:$0xf]  ;;  %v5896_v2 = vcombine.low %v68_v55, %v69_v58  ;;  %v5901_v3 = vcombine.low %v70_v59, %v71_v62  ;;  %v5909_v4 = vld [vmem:[%s7258_s0 + $0x58] sm:$0xf]  ;;  %v5920_v6 = vld [vmem:[%s7258_s0 + $0x5c] sm:$0xf] }
  0x11   :  { %v5894_v0 = vcombine.low %v71_v62, %v72_v63  ;;  %v5912_v5 = vcombine.low %v72_v63, %v5909_v4  ;;  %v5925_v7 = vld [vmem:[%s7258_s0 + $0x60] sm:$0xf]  ;;  %v76_v9 = vld [vmem:[%s7258_s0 + $0x64] sm:$0xf]  ;;  %v5940_v10 = vld [vmem:[%s7258_s0 + $0x68] sm:$0xf]  ;;  %v6036_v33 = vcombine.low %v5909_v4, %v5920_v6 }
  0x12   :  { %v5929_v8 = vcombine.low %v5920_v6, %v5925_v7  ;;  %v5943_v12 = vcombine.low %v76_v9, %v5940_v10  ;;  %v51_v16 = vld [vmem:[%s7258_s0] sm:$0xf]  ;;  %v5393_v24 = vld [vmem:[%s7257_s1 + $0xf4] ss:$8 sps:$4 sm:$0xff]   ;;  %v5391_v25 = vld [vmem:[%s7257_s1 + $0xf0] ss:$8 sps:$4 sm:$0xff]  }
  0x13   :  { %290 = vmatpush1.bf16.msra.mxu0 %v5338_v13  ;;  %v78_v13 = vld [vmem:[%s7258_s0 + $0x6c] sm:$0xf]  ;;  %v5409_v40 = vld [vmem:[%s7257_s1 + $0x130] ss:$8 sps:$4 sm:$0xff]   ;;  %v5418_v47 = vld [vmem:[%s7257_s1 + $0x160] ss:$8 sps:$4 sm:$0xff]  }
  0x14   :  { %291 = vmatprep.subr.bf16.mxu0 %v5339_v14  ;;  %v5954_v14 = vld [vmem:[%s7258_s0 + $0x70] sm:$0xf]  ;;  %v5408_v32 = vld [vmem:[%s7257_s1 + $0x124] ss:$8 sps:$4 sm:$0xff]   ;;  %v5423_v50 = vld [vmem:[%s7257_s1 + $0x174] ss:$8 sps:$4 sm:$0xff]  }
  0x15   :  { %v5957_v15 = vcombine.low %v78_v13, %v5954_v14  ;;  %v5414_v41 = vld [vmem:[%s7257_s1 + $0x144] ss:$8 sps:$4 sm:$0xff]   ;;  %v5421_v51 = vld [vmem:[%s7257_s1 + $0x170] ss:$8 sps:$4 sm:$0xff]   ;;  %v6131_v55 = vld [vmem:[%s7258_s0 + $0x74] sm:$0xf] }
  0x16   :  { %v5420_v46 = vld [vmem:[%s7257_s1 + $0x164] ss:$8 sps:$4 sm:$0xff]   ;;  %v6135_v58 = vcombine.low %v5954_v14, %v6131_v55  ;;  %v5425_v59 = vld [vmem:[%s7257_s1 + $0x180] ss:$8 sps:$4 sm:$0xff]   ;;  %v5430_v62 = vld [vmem:[%s7257_s1 + $0x194] ss:$8 sps:$4 sm:$0xff]  }
  0x17   :  { %292 = vmatpush1.bf16.msra.mxu0 %v5341_v17  ;;  %v4399_v17 = vcombine.low %v51_v16, %v5751_v18  ;;  %v5387_v18 = vld [vmem:[%s7257_s1 + $0xe4] ss:$8 sps:$4 sm:$0xff]   ;;  %v5428_v63 = vld [vmem:[%s7257_s1 + $0x190] ss:$8 sps:$4 sm:$0xff]   ;;  %v5431_v6 = vld [vmem:[%s7257_s1 + $0x1a0] ss:$8 sps:$4 sm:$0xff]  }
  0x18   :  { %572 = vmatprep.subr.bf16.mxu0 %v5346_v20  ;;  %v5375_v20 = vld [vmem:[%s7257_s1 + $0xc0] ss:$8 sps:$4 sm:$0xff]   ;;  %v5427_v54 = vld [vmem:[%s7257_s1 + $0x184] ss:$8 sps:$4 sm:$0xff]   ;;  %vm2490_vm3 = vcmask 1041408   ;;  %vm2474_vm4 = vcmask 687104  }
  0x19   :  { %v5433_v4 = vld [vmem:[%s7257_s1 + $0x1a4] ss:$8 sps:$4 sm:$0xff]   ;;  %v1669_v14 = vld [vmem:[%s7261_s2] sm:$0x3]  ;;  %vm3421_vm5 = vcmask 261120   ;;  %vm5615_vm6 = vmmov 0  }
  0x1a   :  { %4385 = vmatmul.mubr.msk.bf16.vlgmr.msra.gmra.mrb[0].mxu0 %vm238_vm0, %v4359_v21  ;;  %v5382_v21 = vld [vmem:[%s7257_s1 + $0xd4] ss:$8 sps:$4 sm:$0xff]   ;;  %vm3734_vm7 = vcmask 654336  }
  0x1b   :  { %573 = vmatpush1.bf16.msra.mxu0 %v5344_v22  ;;  %323 = vmatprep.mubr.bf16.mxu0 %v5613_v1  ;;  %v5380_v22 = vld [vmem:[%s7257_s1 + $0xd0] ss:$8 sps:$4 sm:$0xff]  }
  0x1c   :  { %574 = vmatprep.subr.bf16.mxu0 %v5351_v23  ;;  %v5385_v23 = vld [vmem:[%s7257_s1 + $0xe0] ss:$8 sps:$4 sm:$0xff]  }
  0x1f   :  { %575 = vmatpush1.bf16.msra.mxu0 %v5349_v26  ;;  %v5398_v26 = vld [vmem:[%s7257_s1 + $0x104] ss:$8 sps:$4 sm:$0xff]  }
  0x20   :  { %576 = vmatprep.subr.bf16.mxu0 %v5356_v28  ;;  %v5396_v28 = vld [vmem:[%s7257_s1 + $0x100] ss:$8 sps:$4 sm:$0xff]  }
  0x22   :  { %4386 = vmatmul.mubr.msk.bf16.gmra.mrb[4].mxu0 %vm238_vm0, %v5784_v30 }
  0x23   :  { %333 = vmatprep.mubr.bf16.mxu0 %v5613_v1  ;;  %577 = vmatpush1.bf16.msra.mxu0 %v5354_v29  ;;  %v5403_v29 = vld [vmem:[%s7257_s1 + $0x114] ss:$8 sps:$4 sm:$0xff]  }
  0x24   :  { %578 = vmatprep.subr.bf16.mxu0 %v5362_v31  ;;  %v5401_v31 = vld [vmem:[%s7257_s1 + $0x110] ss:$8 sps:$4 sm:$0xff]  }
  0x27   :  { %579 = vmatpush1.bf16.msra.mxu0 %v5360_v34  ;;  %v6042_v34 = vcombine.low %v5925_v7, %v76_v9  ;;  %v5434_v7 = vld [vmem:[%s7257_s1 + $0x1b0] ss:$8 sps:$4 sm:$0xff]   ;;  %v5439_v9 = vld [vmem:[%s7257_s1 + $0x1c4] ss:$8 sps:$4 sm:$0xff]  }
  0x28   :  { %580 = vmatprep.subr.bf16.mxu0 %v5367_v35  ;;  %v6048_v35 = vcombine.low %v5940_v10, %v78_v13  ;;  %v5437_v10 = vld [vmem:[%s7257_s1 + $0x1c0] ss:$8 sps:$4 sm:$0xff]   ;;  %v5440_v13 = vld [vmem:[%s7257_s1 + $0x1d0] ss:$8 sps:$4 sm:$0xff]  }
  0x2a   :  { %4387 = vmatmul.mubr.msk.bf16.gmra.mrb[8].mxu0 %vm238_vm0, %v5806_v37 }
  0x2b   :  { %343 = vmatprep.mubr.bf16.mxu0 %v5613_v1  ;;  %581 = vmatpush1.bf16.msra.mxu0 %v5365_v38  ;;  %v5406_v38 = vld [vmem:[%s7257_s1 + $0x120] ss:$8 sps:$4 sm:$0xff]  }
  0x2c   :  { %582 = vmatprep.subr.bf16.mxu0 %v5372_v39  ;;  %v5411_v39 = vld [vmem:[%s7257_s1 + $0x134] ss:$8 sps:$4 sm:$0xff]  }
  0x2f   :  { %583 = vmatpush1.bf16.msra.mxu0 %v5370_v42  ;;  %v5412_v42 = vld [vmem:[%s7257_s1 + $0x140] ss:$8 sps:$4 sm:$0xff]  }
  0x30   :  { %824 = vmatprep.subr.bf16.mxu0 %v5377_v44  ;;  %v5415_v44 = vld [vmem:[%s7257_s1 + $0x150] ss:$8 sps:$4 sm:$0xff]  }
  0x32   :  { %4388 = vmatmul.mubr.msk.bf16.gmra.mrb[12].mxu0 %vm238_vm0, %v5831_v45 }
  0x33   :  { %353 = vmatprep.mubr.bf16.mxu0 %v5613_v1 }
  0x3a   :  { %4389 = vmatmul.mubr.msk.bf16.gmra.mrb[16].mxu0 %vm238_vm0, %v5844_v49 }
  0x3b   :  { %363 = vmatprep.mubr.bf16.mxu0 %v5613_v1 }
  0x42   :  { %4390 = vmatmul.mubr.msk.bf16.gmra.mrb[20].mxu0 %vm238_vm0, %v5857_v53 }
  0x43   :  { %373 = vmatprep.mubr.bf16.mxu0 %v5613_v1 }
  0x4a   :  { %4391 = vmatmul.mubr.msk.bf16.gmra.mrb[24].mxu0 %vm238_vm0, %v5870_v57 }
  0x4b   :  { %383 = vmatprep.mubr.bf16.mxu0 %v5613_v1 }
  0x52   :  { %4392 = vmatmul.mubr.msk.bf16.gmra.mrb[28].mxu0 %vm238_vm0, %v5883_v61 }
  0x53   :  { %393 = vmatprep.mubr.bf16.mxu0 %v5613_v1 }
  0x5a   :  { %4393 = vmatmul.mubr.msk.bf16.gmra.mrb[32].mxu0 %vm238_vm0, %v5896_v2 }
  0x5b   :  { %403 = vmatprep.mubr.bf16.mxu0 %v5613_v1 }
  0x62   :  { %4394 = vmatmul.mubr.msk.bf16.gmra.mrb[36].mxu0 %vm238_vm0, %v5901_v3 }
  0x63   :  { %413 = vmatprep.mubr.bf16.mxu0 %v5613_v1 }
  0x6a   :  { %4395 = vmatmul.mubr.msk.bf16.gmra.mrb[40].mxu0 %vm238_vm0, %v5912_v5 }
  0x6b   :  { %423 = vmatprep.mubr.bf16.mxu0 %v5613_v1 }
  0x72   :  { %4396 = vmatmul.mubr.msk.bf16.gmra.mrb[44].mxu0 %vm238_vm0, %v5929_v8 }
  0x73   :  { %433 = vmatprep.mubr.bf16.mxu0 %v5613_v1 }
  0x7a   :  { %4397 = vmatmul.mubr.msk.bf16.gmra.mrb[48].mxu0 %vm238_vm0, %v5943_v12 }
  0x7b   :  { %443 = vmatprep.mubr.bf16.mxu0 %v5613_v1 }
  0x82   :  { %4398 = vmatmul.mubr.msk.bf16.gmra.mrb[52].mxu0 %vm238_vm0, %v5957_v15 }
  0x83   :  { %604 = vmatprep.mubr.bf16.mxu0 %v5613_v1 }
  0x8a   :  { %4425 = vmatmul.mubr.msk.bf16.vlgmr.msra.gmra.mrb[0].mxu0 %vm238_vm0, %v4399_v17 }
  0x8b   :  { %825 = vmatpush1.bf16.msra.mxu0 %v5375_v20  ;;  %614 = vmatprep.mubr.bf16.mxu0 %v5613_v1 }
  0x8c   :  { %826 = vmatprep.subr.bf16.mxu0 %v5382_v21 }
  0x8f   :  { %827 = vmatpush1.bf16.msra.mxu0 %v5380_v22 }
  0x90   :  { %828 = vmatprep.subr.bf16.mxu0 %v5387_v18 }
  0x92   :  { %4426 = vmatmul.mubr.msk.bf16.gmra.mrb[4].mxu0 %vm238_vm0, %v5728_v11 }
  0x93   :  { %624 = vmatprep.mubr.bf16.mxu0 %v5613_v1  ;;  %829 = vmatpush1.bf16.msra.mxu0 %v5385_v23 }
  0x94   :  { %830 = vmatprep.subr.bf16.mxu0 %v5393_v24 }
  0x97   :  { %831 = vmatpush1.bf16.msra.mxu0 %v5391_v25 }
  0x98   :  { %832 = vmatprep.subr.bf16.mxu0 %v5398_v26 }
  0x9a   :  { %4427 = vmatmul.mubr.msk.bf16.gmra.mrb[8].mxu0 %vm238_vm0, %v5753_v19 }
  0x9b   :  { %634 = vmatprep.mubr.bf16.mxu0 %v5613_v1  ;;  %833 = vmatpush1.bf16.msra.mxu0 %v5396_v28 }
  0x9c   :  { %834 = vmatprep.subr.bf16.mxu0 %v5403_v29 }
  0x9f   :  { %835 = vmatpush1.bf16.msra.mxu0 %v5401_v31 }
  0xa0   :  { %1132 = vmatprep.subr.bf16.mxu0 %v5408_v32 }
  0xa2   :  { %4428 = vmatmul.mubr.msk.bf16.gmra.mrb[12].mxu0 %vm238_vm0, %v5776_v27 }
  0xa3   :  { %644 = vmatprep.mubr.bf16.mxu0 %v5613_v1 }
  0xaa   :  { %4429 = vmatmul.mubr.msk.bf16.gmra.mrb[16].mxu0 %vm238_vm0, %v5804_v36 }
  0xab   :  { %654 = vmatprep.mubr.bf16.mxu0 %v5613_v1 }
  0xb2   :  { %4430 = vmatmul.mubr.msk.bf16.gmra.mrb[20].mxu0 %vm238_vm0, %v5826_v43 }
  0xb3   :  { %664 = vmatprep.mubr.bf16.mxu0 %v5613_v1 }
  0xba   :  { %4431 = vmatmul.mubr.msk.bf16.gmra.mrb[24].mxu0 %vm238_vm0, %v5842_v48 }
  0xbb   :  { %674 = vmatprep.mubr.bf16.mxu0 %v5613_v1 }
  0xc2   :  { %4432 = vmatmul.mubr.msk.bf16.gmra.mrb[28].mxu0 %vm238_vm0, %v5855_v52 }
  0xc3   :  { %684 = vmatprep.mubr.bf16.mxu0 %v5613_v1 }
  0xca   :  { %4433 = vmatmul.mubr.msk.bf16.gmra.mrb[32].mxu0 %vm238_vm0, %v5868_v56 }
  0xcb   :  { %694 = vmatprep.mubr.bf16.mxu0 %v5613_v1 }
  0xd2   :  { %4434 = vmatmul.mubr.msk.bf16.gmra.mrb[36].mxu0 %vm238_vm0, %v5881_v60 }
  0xd3   :  { %704 = vmatprep.mubr.bf16.mxu0 %v5613_v1 }
  0xda   :  { %4435 = vmatmul.mubr.msk.bf16.gmra.mrb[40].mxu0 %vm238_vm0, %v5894_v0 }
  0xdb   :  { %714 = vmatprep.mubr.bf16.mxu0 %v5613_v1 }
  0xe2   :  { %4436 = vmatmul.mubr.msk.bf16.gmra.mrb[44].mxu0 %vm238_vm0, %v6036_v33 }
  0xe3   :  { %724 = vmatprep.mubr.bf16.mxu0 %v5613_v1 }
  0xea   :  { %4437 = vmatmul.mubr.msk.bf16.gmra.mrb[48].mxu0 %vm238_vm0, %v6042_v34 }
  0xeb   :  { %734 = vmatprep.mubr.bf16.mxu0 %v5613_v1 }
  0xf2   :  { %4438 = vmatmul.mubr.msk.bf16.gmra.mrb[52].mxu0 %vm238_vm0, %v6048_v35 }
  0xf3   :  { %856 = vmatprep.mubr.bf16.mxu0 %v5613_v1 }
  0xfa   :  { %4464 = vmatmul.mubr.msk.bf16.vlgmr.msra.gmra.mrb[0].mxu0 %vm238_vm0, %v5728_v11  ;;  %v5417_v11 = vld [vmem:[%s7257_s1 + $0x154] ss:$8 sps:$4 sm:$0xff]  }
  0xfb   :  { %1133 = vmatpush1.bf16.msra.mxu0 %v5406_v38  ;;  %866 = vmatprep.mubr.bf16.mxu0 %v5613_v1  ;;  %v5456_v38 = vld [vmem:[%s7260_s4] sm:$0xff]  }
  0xfc   :  { %1134 = vmatprep.subr.bf16.mxu0 %v5411_v39 }
  0xff   :  { %1135 = vmatpush1.bf16.msra.mxu0 %v5409_v40 }
 0x100   :  { %1136 = vmatprep.subr.bf16.mxu0 %v5414_v41 }
 0x102   :  { %4465 = vmatmul.mubr.msk.bf16.gmra.mrb[4].mxu0 %vm238_vm0, %v5753_v19 }
 0x103   :  { %876 = vmatprep.mubr.bf16.mxu0 %v5613_v1  ;;  %1137 = vmatpush1.bf16.msra.mxu0 %v5412_v42 }
 0x104   :  { %1138 = vmatprep.subr.bf16.mxu0 %v5417_v11 }
 0x107   :  { %1139 = vmatpush1.bf16.msra.mxu0 %v5415_v44 }
 0x108   :  { %1140 = vmatprep.subr.bf16.mxu0 %v5420_v46 }
 0x10a   :  { %4466 = vmatmul.mubr.msk.bf16.gmra.mrb[8].mxu0 %vm238_vm0, %v5776_v27 }
 0x10b   :  { %886 = vmatprep.mubr.bf16.mxu0 %v5613_v1  ;;  %1141 = vmatpush1.bf16.msra.mxu0 %v5418_v47  ;;  %v5457_v47 = vld [vmem:[%s7260_s4 + $0x8] sm:$0xff]  }
 0x10c   :  { %1142 = vmatprep.subr.bf16.mxu0 %v5423_v50 }
 0x10f   :  { %1143 = vmatpush1.bf16.msra.mxu0 %v5421_v51 }
 0x110   :  { %1440 = vmatprep.subr.bf16.mxu0 %v5427_v54 }
 0x112   :  { %4467 = vmatmul.mubr.msk.bf16.gmra.mrb[12].mxu0 %vm238_vm0, %v5804_v36 }
 0x113   :  { %896 = vmatprep.mubr.bf16.mxu0 %v5613_v1 }
 0x11a   :  { %4468 = vmatmul.mubr.msk.bf16.gmra.mrb[16].mxu0 %vm238_vm0, %v5826_v43 }
 0x11b   :  { %906 = vmatprep.mubr.bf16.mxu0 %v5613_v1 }
 0x122   :  { %4469 = vmatmul.mubr.msk.bf16.gmra.mrb[20].mxu0 %vm238_vm0, %v5842_v48 }
 0x123   :  { %916 = vmatprep.mubr.bf16.mxu0 %v5613_v1 }
 0x12a   :  { %4470 = vmatmul.mubr.msk.bf16.gmra.mrb[24].mxu0 %vm238_vm0, %v5855_v52 }
 0x12b   :  { %926 = vmatprep.mubr.bf16.mxu0 %v5613_v1 }
 0x132   :  { %4471 = vmatmul.mubr.msk.bf16.gmra.mrb[28].mxu0 %vm238_vm0, %v5868_v56 }
 0x133   :  { %936 = vmatprep.mubr.bf16.mxu0 %v5613_v1 }
 0x13a   :  { %4472 = vmatmul.mubr.msk.bf16.gmra.mrb[32].mxu0 %vm238_vm0, %v5881_v60 }
 0x13b   :  { %946 = vmatprep.mubr.bf16.mxu0 %v5613_v1 }
 0x142   :  { %4473 = vmatmul.mubr.msk.bf16.gmra.mrb[36].mxu0 %vm238_vm0, %v5894_v0 }
 0x143   :  { %956 = vmatprep.mubr.bf16.mxu0 %v5613_v1 }
 0x14a   :  { %4474 = vmatmul.mubr.msk.bf16.gmra.mrb[40].mxu0 %vm238_vm0, %v6036_v33 }
 0x14b   :  { %966 = vmatprep.mubr.bf16.mxu0 %v5613_v1 }
 0x152   :  { %4475 = vmatmul.mubr.msk.bf16.gmra.mrb[44].mxu0 %vm238_vm0, %v6042_v34 }
 0x153   :  { %976 = vmatprep.mubr.bf16.mxu0 %v5613_v1 }
 0x15a   :  { %4476 = vmatmul.mubr.msk.bf16.gmra.mrb[48].mxu0 %vm238_vm0, %v6048_v35 }
 0x15b   :  { %986 = vmatprep.mubr.bf16.mxu0 %v5613_v1 }
 0x162   :  { %4477 = vmatmul.mubr.msk.bf16.gmra.mrb[52].mxu0 %vm238_vm0, %v6135_v58 }
 0x163   :  { %1164 = vmatprep.mubr.bf16.mxu0 %v5613_v1 }
 0x16a   :  { %4503 = vmatmul.mubr.msk.bf16.vlgmr.msra.gmra.mrb[0].mxu0 %vm238_vm0, %v5784_v30  ;;  %v5436_v30 = vld [vmem:[%s7257_s1 + $0x1b4] ss:$8 sps:$4 sm:$0xff]  }
 0x16b   :  { %1441 = vmatpush1.bf16.msra.mxu0 %v5425_v59  ;;  %1174 = vmatprep.mubr.bf16.mxu0 %v5613_v1 }
 0x16c   :  { %1442 = vmatprep.subr.bf16.mxu0 %v5430_v62 }
 0x16f   :  { %1443 = vmatpush1.bf16.msra.mxu0 %v5428_v63  ;;  %v5458_v63 = vld [vmem:[%s7260_s4 + $0x10] sm:$0xff]  }
 0x170   :  { %1444 = vmatprep.subr.bf16.mxu0 %v5433_v4 }
 0x172   :  { %4504 = vmatmul.mubr.msk.bf16.gmra.mrb[4].mxu0 %vm238_vm0, %v5806_v37  ;;  %v5442_v37 = vld [vmem:[%s7257_s1 + $0x1d4] ss:$8 sps:$4 sm:$0xff]  }
 0x173   :  { %1184 = vmatprep.mubr.bf16.mxu0 %v5613_v1  ;;  %1445 = vmatpush1.bf16.msra.mxu0 %v5431_v6 }
 0x174   :  { %1446 = vmatprep.subr.bf16.mxu0 %v5436_v30 }
 0x177   :  { %1447 = vmatpush1.bf16.msra.mxu0 %v5434_v7 }
 0x178   :  { %1448 = vmatprep.subr.bf16.mxu0 %v5439_v9 }
 0x17a   :  { %4505 = vmatmul.mubr.msk.bf16.gmra.mrb[8].mxu0 %vm238_vm0, %v5831_v45  ;;  %v5445_v45 = vld [vmem:[%s7259_s3] sm:$0xff]  }
 0x17b   :  { %1194 = vmatprep.mubr.bf16.mxu0 %v5613_v1  ;;  %1449 = vmatpush1.bf16.msra.mxu0 %v5437_v10 }
 0x17c   :  { %1450 = vmatprep.subr.bf16.mxu0 %v5442_v37  ;;  %1953 = vmatpush1.bf16.msra.mxu1 %v5445_v45 }
 0x17d   :  { %1954 = vmatprep.subr.bf16.mxu1 %v5613_v1 }
 0x17f   :  { %1451 = vmatpush1.bf16.msra.mxu0 %v5440_v13  ;;  %v5459_v13 = vld [vmem:[%s7260_s4 + $0x18] sm:$0xff]  }
 0x182   :  { %4506 = vmatmul.mubr.msk.bf16.gmra.mrb[12].mxu0 %vm238_vm0, %v5844_v49  ;;  %v5446_v49 = vld [vmem:[%s7259_s3 + $0x8] sm:$0xff]  }
 0x183   :  { %1204 = vmatprep.mubr.bf16.mxu0 %v5613_v1  ;;  %1955 = vmatpush1.bf16.msra.mxu1 %v5446_v49 }
 0x184   :  { %1956 = vmatprep.subr.bf16.mxu1 %v5613_v1 }
 0x18a   :  { %4507 = vmatmul.mubr.msk.bf16.gmra.mrb[16].mxu0 %vm238_vm0, %v5857_v53  ;;  %v5447_v53 = vld [vmem:[%s7259_s3 + $0x10] sm:$0xff]  }
 0x18b   :  { %1214 = vmatprep.mubr.bf16.mxu0 %v5613_v1  ;;  %1957 = vmatpush1.bf16.msra.mxu1 %v5447_v53 }
 0x18c   :  { %1958 = vmatprep.subr.bf16.mxu1 %v5613_v1 }
 0x192   :  { %4508 = vmatmul.mubr.msk.bf16.gmra.mrb[20].mxu0 %vm238_vm0, %v5870_v57  ;;  %v6224_v57 = vld [vmem:[%s7258_s0 + $0x78] sm:$0xf] }
 0x193   :  { %1224 = vmatprep.mubr.bf16.mxu0 %v5613_v1 }
 0x19a   :  { %4509 = vmatmul.mubr.msk.bf16.gmra.mrb[24].mxu0 %vm238_vm0, %v5883_v61  ;;  %v5448_v61 = vld [vmem:[%s7259_s3 + $0x18] sm:$0xff]  }
 0x19b   :  { %1234 = vmatprep.mubr.bf16.mxu0 %v5613_v1  ;;  %1959 = vmatpush1.bf16.msra.mxu1 %v5448_v61 }
 0x19c   :  { %1960 = vmatprep.subr.bf16.mxu1 %v5613_v1 }
 0x1a2   :  { %4510 = vmatmul.mubr.msk.bf16.gmra.mrb[28].mxu0 %vm238_vm0, %v5896_v2  ;;  %v4490_v2 = vcombine.low %v6131_v55, %v6224_v57 }
 0x1a3   :  { %1244 = vmatprep.mubr.bf16.mxu0 %v5613_v1 }
 0x1aa   :  { %4511 = vmatmul.mubr.msk.bf16.gmra.mrb[32].mxu0 %vm238_vm0, %v5901_v3  ;;  %v5449_v3 = vld [vmem:[%s7259_s3 + $0x20] sm:$0xff]  }
 0x1ab   :  { %1254 = vmatprep.mubr.bf16.mxu0 %v5613_v1  ;;  %1961 = vmatpush1.bf16.msra.mxu1 %v5449_v3 }
 0x1ac   :  { %1962 = vmatprep.subr.bf16.mxu1 %v5613_v1 }
 0x1b2   :  { %4512 = vmatmul.mubr.msk.bf16.gmra.mrb[36].mxu0 %vm238_vm0, %v5912_v5  ;;  %v5450_v5 = vld [vmem:[%s7259_s3 + $0x28] sm:$0xff]  }
 0x1b3   :  { %1264 = vmatprep.mubr.bf16.mxu0 %v5613_v1  ;;  %1963 = vmatpush1.bf16.msra.mxu1 %v5450_v5  ;;  %v5460_v5 = vld [vmem:[%s7260_s4 + $0x20] sm:$0xff]  }
 0x1b4   :  { %1964 = vmatprep.subr.bf16.mxu1 %v5613_v1 }
 0x1ba   :  { %4513 = vmatmul.mubr.msk.bf16.gmra.mrb[40].mxu0 %vm238_vm0, %v5929_v8  ;;  %v5451_v8 = vld [vmem:[%s7259_s3 + $0x30] sm:$0xff]  }
 0x1bb   :  { %1274 = vmatprep.mubr.bf16.mxu0 %v5613_v1  ;;  %1965 = vmatpush1.bf16.msra.mxu1 %v5451_v8 }
 0x1bc   :  { %1966 = vmatprep.subr.bf16.mxu1 %v5613_v1 }
 0x1c2   :  { %4514 = vmatmul.mubr.msk.bf16.gmra.mrb[44].mxu0 %vm238_vm0, %v5943_v12  ;;  %v5452_v12 = vld [vmem:[%s7259_s3 + $0x38] sm:$0xff]  }
 0x1c3   :  { %1284 = vmatprep.mubr.bf16.mxu0 %v5613_v1  ;;  %1967 = vmatpush1.bf16.msra.mxu1 %v5452_v12 }
 0x1c4   :  { %1968 = vmatprep.subr.bf16.mxu1 %v5613_v1 }
 0x1ca   :  { %4515 = vmatmul.mubr.msk.bf16.gmra.mrb[48].mxu0 %vm238_vm0, %v5957_v15 }
 0x1cb   :  { %1294 = vmatprep.mubr.bf16.mxu0 %v5613_v1 }
 0x1d2   :  { %4516 = vmatmul.mubr.msk.bf16.gmra.mrb[52].mxu0 %vm238_vm0, %v4490_v2 }
 0x1d3   :  { %1472 = vmatprep.mubr.bf16.mxu0 %v5613_v1 }
 0x1da   :  { %4542 = vmatmul.mubr.msk.bf16.vlgmr.msra.gmra.mrb[0].mxu0 %vm238_vm0, %v5753_v19  ;;  %v5453_v19 = vld [vmem:[%s7259_s3 + $0x40] sm:$0xff]  }
 0x1db   :  { %1482 = vmatprep.mubr.bf16.mxu0 %v5613_v1  ;;  %1969 = vmatpush1.bf16.msra.mxu1 %v5453_v19 }
 0x1dc   :  { %1970 = vmatprep.subr.bf16.mxu1 %v5613_v1 }
 0x1e2   :  { %4543 = vmatmul.mubr.msk.bf16.gmra.mrb[4].mxu0 %vm238_vm0, %v5776_v27  ;;  %v5454_v27 = vld [vmem:[%s7259_s3 + $0x48] sm:$0xff]  }
 0x1e3   :  { %1492 = vmatprep.mubr.bf16.mxu0 %v5613_v1  ;;  %1971 = vmatpush1.bf16.msra.mxu1 %v5454_v27 }
 0x1e4   :  { %1972 = vmatprep.subr.bf16.mxu1 %v5613_v1 }
 0x1ea   :  { %4544 = vmatmul.mubr.msk.bf16.gmra.mrb[8].mxu0 %vm238_vm0, %v5804_v36  ;;  %v5455_v36 = vld [vmem:[%s7259_s3 + $0x50] ss:$0 sps:$4 sm:$0xff]  }
 0x1eb   :  { %1502 = vmatprep.mubr.bf16.mxu0 %v5613_v1 }
 0x1f2   :  { %4545 = vmatmul.mubr.msk.bf16.gmra.mrb[12].mxu0 %vm238_vm0, %v5826_v43  ;;  %v1950_v43 = vsel %vm1948_vm1, %v5455_v36, 0 }
 0x1f3   :  { %1512 = vmatprep.mubr.bf16.mxu0 %v5613_v1  ;;  %1973 = vmatpush1.bf16.msra.mxu1 %v1950_v43 }
 0x1f4   :  { %2184 = vmatprep.subr.bf16.mxu1 %v5613_v1 }
 0x1fa   :  { %4546 = vmatmul.mubr.msk.bf16.gmra.mrb[16].mxu0 %vm238_vm0, %v5842_v48  ;;  %v82_v48 = vld [vmem:[%s7258_s0 + $0x7c] sm:$0xf] }
 0x1fb   :  { %1522 = vmatprep.mubr.bf16.mxu0 %v5613_v1 }
 0x202   :  { %4547 = vmatmul.mubr.msk.bf16.gmra.mrb[20].mxu0 %vm238_vm0, %v5855_v52  ;;  %v4529_v52 = vcombine.low %v6224_v57, %v82_v48 }
 0x203   :  { %1532 = vmatprep.mubr.bf16.mxu0 %v5613_v1 }
 0x20a   :  { %4548 = vmatmul.mubr.msk.bf16.gmra.mrb[24].mxu0 %vm238_vm0, %v5868_v56  ;;  %v1671_v56 = vlaneseq }
 0x20b   :  { %1542 = vmatprep.mubr.bf16.mxu0 %v5613_v1 }
 0x212   :  { %4549 = vmatmul.mubr.msk.bf16.gmra.mrb[28].mxu0 %vm238_vm0, %v5881_v60  ;;  %v6310_v60 = vshrl.u32 %v1671_v56, 7 }
 0x213   :  { %1552 = vmatprep.mubr.bf16.mxu0 %v5613_v1 }
 0x214   :  { %v1677_v15 = vsub.s32 1, %v6310_v60 }
 0x216   :  { %v6323_v17 = vrot.slane %v1669_v14, %v1677_v15 }
 0x21a   :  { %4550 = vmatmul.mubr.msk.bf16.gmra.mrb[32].mxu0 %vm238_vm0, %v5894_v0  ;;  %v1673_v0 = vsub.s32 0, %v6310_v60 }
 0x21b   :  { %1562 = vmatprep.mubr.bf16.mxu0 %v5613_v1 }
 0x21c   :  { %v6319_v16 = vrot.slane %v1669_v14, %v1673_v0 }
 0x222   :  { %4551 = vmatmul.mubr.msk.bf16.gmra.mrb[36].mxu0 %vm238_vm0, %v6036_v33 }
 0x223   :  { %1572 = vmatprep.mubr.bf16.mxu0 %v5613_v1 }
 0x22a   :  { %4552 = vmatmul.mubr.msk.bf16.gmra.mrb[40].mxu0 %vm238_vm0, %v6042_v34 }
 0x22b   :  { %1582 = vmatprep.mubr.bf16.mxu0 %v5613_v1 }
 0x232   :  { %4553 = vmatmul.mubr.msk.bf16.gmra.mrb[44].mxu0 %vm238_vm0, %v6048_v35 }
 0x233   :  { %1592 = vmatprep.mubr.bf16.mxu0 %v5613_v1 }
 0x23a   :  { %4554 = vmatmul.mubr.msk.bf16.gmra.mrb[48].mxu0 %vm238_vm0, %v6135_v58 }
 0x23b   :  { %1602 = vmatprep.mubr.bf16.mxu0 %v5613_v1 }
 0x242   :  { %4555 = vmatmul.mubr.msk.bf16.gmra.mrb[52].mxu0 %vm238_vm0, %v4529_v52  ;;  %v5461_v52 = vld [vmem:[%s7260_s4 + $0x28] sm:$0xff]  }
 0x2ad   :  { %v1474_v20 = vpop.f32.mrb[0].mxu0 }
 0x2ae   :  { %v1681_v21 = vadd.f32 %v6319_v16, %v1474_v20  ;;  %v1476_v22 = vpop.f32.mrb[1].mxu0 }
 0x2af   :  { %v1682_v18 = vadd.f32 %v6323_v17, %v1476_v22  ;;  %v1478_v23 = vpop.f32.mrb[2].mxu0 }
 0x2b0   :  { %v1683_v24 = vadd.f32 %v6319_v16, %v1478_v23  ;;  %v1480_v25 = vpop.f32.mrb[3].mxu0  ;;  %v1737_v28 = vmax.f32 %v1681_v21, 0.0 }
 0x2b1   :  { %v1684_v26 = vadd.f32 %v6323_v17, %v1480_v25  ;;  %v1738_v31 = vmax.f32 %v1682_v18, 0.0 }
 0x2b2   :  { %v1739_v29 = vmax.f32 %v1683_v24, 0.0  ;;  %v5462_v24 = vld [vmem:[%s7260_s4 + $0x30] sm:$0xff]  }
 0x2b3   :  { %v1740_v32 = vmax.f32 %v1684_v26, 0.0 }
 0x2b4   :  { %v6329_v33 = vpack.c.bf16 %v1739_v29, %v1737_v28 }
 0x2b5   :  { %v1484_v34 = vpop.f32.mrb[4].mxu0  ;;  %v6331_v35 = vpack.c.bf16 %v1740_v32, %v1738_v31 }
 0x2b6   :  { %v1685_v39 = vadd.f32 %v6319_v16, %v1484_v34  ;;  %v1486_v40 = vpop.f32.mrb[5].mxu0 }
 0x2b7   :  { %v1686_v41 = vadd.f32 %v6323_v17, %v1486_v40  ;;  %v1488_v42 = vpop.f32.mrb[6].mxu0  ;;  %4567 = vmatprep.mubr.msk.bf16.mxu1 %vm1905_vm2, %v6331_v35 }
 0x2b8   :  { %v1687_v11 = vadd.f32 %v6319_v16, %v1488_v42  ;;  %v1490_v44 = vpop.f32.mrb[7].mxu0  ;;  %1985 = vmatmul.mubr.bf16.vlgmr.msra.gmra.mrb[0].mxu1 %v6329_v33  ;;  %v1741_v50 = vmax.f32 %v1685_v39, 0.0 }
 0x2b9   :  { %v1688_v46 = vadd.f32 %v6323_v17, %v1490_v44  ;;  %2185 = vmatpush1.bf16.msra.mxu1 %v5456_v38  ;;  %v1742_v54 = vmax.f32 %v1686_v41, 0.0  ;;  %v5463_v38 = vld [vmem:[%s7260_s4 + $0x38] sm:$0xff]  }
 0x2ba   :  { %v1743_v51 = vmax.f32 %v1687_v11, 0.0  ;;  %2186 = vmatprep.subr.bf16.mxu1 %v5613_v1 }
 0x2bb   :  { %v1744_v55 = vmax.f32 %v1688_v46, 0.0 }
 0x2bc   :  { %v6347_v58 = vpack.c.bf16 %v1743_v51, %v1741_v50 }
 0x2bd   :  { %v6349_v59 = vpack.c.bf16 %v1744_v55, %v1742_v54  ;;  %v1494_v62 = vpop.f32.mrb[8].mxu0  ;;  %2187 = vmatpush1.bf16.msra.mxu1 %v5457_v47  ;;  %v5464_v47 = vld [vmem:[%s7260_s4 + $0x40] sm:$0xff]  }
 0x2be   :  { %v1689_v4 = vadd.f32 %v6319_v16, %v1494_v62  ;;  %v1496_v6 = vpop.f32.mrb[9].mxu0  ;;  %2188 = vmatprep.subr.bf16.mxu1 %v5613_v1 }
 0x2bf   :  { %v1690_v30 = vadd.f32 %v6323_v17, %v1496_v6  ;;  %v1498_v7 = vpop.f32.mrb[10].mxu0  ;;  %4568 = vmatprep.mubr.msk.bf16.mxu1 %vm1905_vm2, %v6349_v59  ;;  %v5465_v6 = vld [vmem:[%s7260_s4 + $0x48] sm:$0xff]  }
 0x2c0   :  { %v1691_v9 = vadd.f32 %v6319_v16, %v1498_v7  ;;  %v1500_v10 = vpop.f32.mrb[11].mxu0  ;;  %1993 = vmatmul.mubr.bf16.gmra.mrb[4].mxu1 %v6347_v58  ;;  %v1745_v45 = vmax.f32 %v1689_v4, 0.0 }
 0x2c1   :  { %v1692_v37 = vadd.f32 %v6323_v17, %v1500_v10  ;;  %2189 = vmatpush1.bf16.msra.mxu1 %v5458_v63  ;;  %v1746_v53 = vmax.f32 %v1690_v30, 0.0 }
 0x2c2   :  { %v1747_v49 = vmax.f32 %v1691_v9, 0.0  ;;  %2190 = vmatprep.subr.bf16.mxu1 %v5613_v1  ;;  %v5466_v9 = vld [vmem:[%s7260_s4 + $0x50] ss:$0 sps:$4 sm:$0xff]  }
 0x2c3   :  { %v1748_v57 = vmax.f32 %v1692_v37, 0.0 }
 0x2c4   :  { %v6366_v61 = vpack.c.bf16 %v1747_v49, %v1745_v45 }
 0x2c5   :  { %v6368_v2 = vpack.c.bf16 %v1748_v57, %v1746_v53  ;;  %v1504_v3 = vpop.f32.mrb[12].mxu0  ;;  %2191 = vmatpush1.bf16.msra.mxu1 %v5459_v13 }
 0x2c6   :  { %v1693_v8 = vadd.f32 %v6319_v16, %v1504_v3  ;;  %v1506_v12 = vpop.f32.mrb[13].mxu0  ;;  %2192 = vmatprep.subr.bf16.mxu1 %v5613_v1  ;;  %v2182_v3 = vsel %vm1948_vm1, %v5466_v9, 0 }
 0x2c7   :  { %v1694_v19 = vadd.f32 %v6323_v17, %v1506_v12  ;;  %v1508_v27 = vpop.f32.mrb[14].mxu0  ;;  %4569 = vmatprep.mubr.msk.bf16.mxu1 %vm1905_vm2, %v6368_v2 }
 0x2c8   :  { %v1695_v36 = vadd.f32 %v6319_v16, %v1508_v27  ;;  %v1510_v43 = vpop.f32.mrb[15].mxu0  ;;  %2001 = vmatmul.mubr.bf16.gmra.mrb[8].mxu1 %v6366_v61  ;;  %v1749_v56 = vmax.f32 %v1693_v8, 0.0 }
 0x2c9   :  { %v1696_v48 = vadd.f32 %v6323_v17, %v1510_v43  ;;  %2193 = vmatpush1.bf16.msra.mxu1 %v5460_v5  ;;  %v1750_v20 = vmax.f32 %v1694_v19, 0.0 }
 0x2ca   :  { %v1751_v14 = vmax.f32 %v1695_v36, 0.0  ;;  %2194 = vmatprep.subr.bf16.mxu1 %v5613_v1 }
 0x2cb   :  { %v1752_v21 = vmax.f32 %v1696_v48, 0.0 }
 0x2cc   :  { %v6385_v22 = vpack.c.bf16 %v1751_v14, %v1749_v56 }
 0x2cd   :  { %v6387_v18 = vpack.c.bf16 %v1752_v21, %v1750_v20  ;;  %v1514_v23 = vpop.f32.mrb[16].mxu0  ;;  %2195 = vmatpush1.bf16.msra.mxu1 %v5461_v52 }
 0x2ce   :  { %v1697_v25 = vadd.f32 %v6319_v16, %v1514_v23  ;;  %v1516_v26 = vpop.f32.mrb[17].mxu0  ;;  %2196 = vmatprep.subr.bf16.mxu1 %v5613_v1 }
 0x2cf   :  { %v1698_v28 = vadd.f32 %v6323_v17, %v1516_v26  ;;  %v1518_v29 = vpop.f32.mrb[18].mxu0  ;;  %4570 = vmatprep.mubr.msk.bf16.mxu1 %vm1905_vm2, %v6387_v18 }
 0x2d0   :  { %v1699_v31 = vadd.f32 %v6319_v16, %v1518_v29  ;;  %v1520_v32 = vpop.f32.mrb[19].mxu0  ;;  %2009 = vmatmul.mubr.bf16.gmra.mrb[12].mxu1 %v6385_v22  ;;  %v1753_v39 = vmax.f32 %v1697_v25, 0.0 }
 0x2d1   :  { %v1700_v34 = vadd.f32 %v6323_v17, %v1520_v32  ;;  %2197 = vmatpush1.bf16.msra.mxu1 %v5462_v24  ;;  %v1754_v41 = vmax.f32 %v1698_v28, 0.0 }
 0x2d2   :  { %v1755_v40 = vmax.f32 %v1699_v31, 0.0  ;;  %2198 = vmatprep.subr.bf16.mxu1 %v5613_v1 }
 0x2d3   :  { %v1756_v42 = vmax.f32 %v1700_v34, 0.0 }
 0x2d4   :  { %v6404_v11 = vpack.c.bf16 %v1755_v40, %v1753_v39 }
 0x2d5   :  { %v6406_v44 = vpack.c.bf16 %v1756_v42, %v1754_v41  ;;  %v1524_v46 = vpop.f32.mrb[20].mxu0  ;;  %2199 = vmatpush1.bf16.msra.mxu1 %v5463_v38 }
 0x2d6   :  { %v1701_v50 = vadd.f32 %v6319_v16, %v1524_v46  ;;  %v1526_v51 = vpop.f32.mrb[21].mxu0  ;;  %2200 = vmatprep.subr.bf16.mxu1 %v5613_v1 }
 0x2d7   :  { %v1702_v54 = vadd.f32 %v6323_v17, %v1526_v51  ;;  %v1528_v55 = vpop.f32.mrb[22].mxu0  ;;  %4571 = vmatprep.mubr.msk.bf16.mxu1 %vm1905_vm2, %v6406_v44 }
 0x2d8   :  { %v1703_v62 = vadd.f32 %v6319_v16, %v1528_v55  ;;  %v1530_v63 = vpop.f32.mrb[23].mxu0  ;;  %2017 = vmatmul.mubr.bf16.gmra.mrb[16].mxu1 %v6404_v11  ;;  %v1757_v30 = vmax.f32 %v1701_v50, 0.0 }
 0x2d9   :  { %v1704_v4 = vadd.f32 %v6323_v17, %v1530_v63  ;;  %2201 = vmatpush1.bf16.msra.mxu1 %v5464_v47  ;;  %v1758_v10 = vmax.f32 %v1702_v54, 0.0 }
 0x2da   :  { %v1759_v7 = vmax.f32 %v1703_v62, 0.0  ;;  %2202 = vmatprep.subr.bf16.mxu1 %v5613_v1 }
 0x2db   :  { %v1760_v37 = vmax.f32 %v1704_v4, 0.0 }
 0x2dc   :  { %v6426_v13 = vpack.c.bf16 %v1759_v7, %v1757_v30 }
 0x2dd   :  { %v6428_v45 = vpack.c.bf16 %v1760_v37, %v1758_v10  ;;  %v1534_v49 = vpop.f32.mrb[24].mxu0  ;;  %2203 = vmatpush1.bf16.msra.mxu1 %v5465_v6 }
 0x2de   :  { %v1705_v53 = vadd.f32 %v6319_v16, %v1534_v49  ;;  %v1536_v57 = vpop.f32.mrb[25].mxu0  ;;  %2204 = vmatprep.subr.bf16.mxu1 %v5613_v1 }
 0x2df   :  { %v1706_v5 = vadd.f32 %v6323_v17, %v1536_v57  ;;  %v1538_v8 = vpop.f32.mrb[26].mxu0  ;;  %4572 = vmatprep.mubr.msk.bf16.mxu1 %vm1905_vm2, %v6428_v45 }
 0x2e0   :  { %v1707_v12 = vadd.f32 %v6319_v16, %v1538_v8  ;;  %v1540_v19 = vpop.f32.mrb[27].mxu0  ;;  %2025 = vmatmul.mubr.bf16.gmra.mrb[20].mxu1 %v6426_v13  ;;  %v1761_v36 = vmax.f32 %v1705_v53, 0.0 }
 0x2e1   :  { %v1708_v27 = vadd.f32 %v6323_v17, %v1540_v19  ;;  %2205 = vmatpush1.bf16.msra.mxu1 %v2182_v3  ;;  %v1762_v48 = vmax.f32 %v1706_v5, 0.0 }
 0x2e2   :  { %v1763_v43 = vmax.f32 %v1707_v12, 0.0 }
 0x2e3   :  { %v1764_v52 = vmax.f32 %v1708_v27, 0.0 }
 0x2e4   :  { %v6439_v56 = vpack.c.bf16 %v1763_v43, %v1761_v36 }
 0x2e5   :  { %v6441_v14 = vpack.c.bf16 %v1764_v52, %v1762_v48  ;;  %v1544_v20 = vpop.f32.mrb[28].mxu0 }
 0x2e6   :  { %v1709_v21 = vadd.f32 %v6319_v16, %v1544_v20  ;;  %v1546_v23 = vpop.f32.mrb[29].mxu0 }
 0x2e7   :  { %v1710_v24 = vadd.f32 %v6323_v17, %v1546_v23  ;;  %v1548_v25 = vpop.f32.mrb[30].mxu0  ;;  %4573 = vmatprep.mubr.msk.bf16.mxu1 %vm1905_vm2, %v6441_v14 }
 0x2e8   :  { %v1711_v26 = vadd.f32 %v6319_v16, %v1548_v25  ;;  %v1550_v28 = vpop.f32.mrb[31].mxu0  ;;  %2033 = vmatmul.mubr.bf16.gmra.mrb[24].mxu1 %v6439_v56  ;;  %v1765_v31 = vmax.f32 %v1709_v21, 0.0 }
 0x2e9   :  { %v1712_v29 = vadd.f32 %v6323_v17, %v1550_v28  ;;  %v1766_v34 = vmax.f32 %v1710_v24, 0.0 }
 0x2ea   :  { %v1767_v32 = vmax.f32 %v1711_v26, 0.0 }
 0x2eb   :  { %v1768_v38 = vmax.f32 %v1712_v29, 0.0 }
 0x2ec   :  { %v6450_v39 = vpack.c.bf16 %v1767_v32, %v1765_v31 }
 0x2ed   :  { %v6452_v40 = vpack.c.bf16 %v1768_v38, %v1766_v34  ;;  %v1554_v41 = vpop.f32.mrb[32].mxu0 }
 0x2ee   :  { %v1713_v42 = vadd.f32 %v6319_v16, %v1554_v41  ;;  %v1556_v46 = vpop.f32.mrb[33].mxu0 }
 0x2ef   :  { %v1714_v47 = vadd.f32 %v6323_v17, %v1556_v46  ;;  %v1558_v50 = vpop.f32.mrb[34].mxu0  ;;  %4574 = vmatprep.mubr.msk.bf16.mxu1 %vm1905_vm2, %v6452_v40 }
 0x2f0   :  { %v1715_v51 = vadd.f32 %v6319_v16, %v1558_v50  ;;  %v1560_v54 = vpop.f32.mrb[35].mxu0  ;;  %2041 = vmatmul.mubr.bf16.gmra.mrb[28].mxu1 %v6450_v39  ;;  %v1769_v62 = vmax.f32 %v1713_v42, 0.0 }
 0x2f1   :  { %v1716_v55 = vadd.f32 %v6323_v17, %v1560_v54  ;;  %v1770_v4 = vmax.f32 %v1714_v47, 0.0 }
 0x2f2   :  { %v1771_v63 = vmax.f32 %v1715_v51, 0.0 }
 0x2f3   :  { %v1772_v6 = vmax.f32 %v1716_v55, 0.0 }
 0x2f4   :  { %v6461_v30 = vpack.c.bf16 %v1771_v63, %v1769_v62 }
 0x2f5   :  { %v6463_v7 = vpack.c.bf16 %v1772_v6, %v1770_v4  ;;  %v1564_v9 = vpop.f32.mrb[36].mxu0 }
 0x2f6   :  { %v1717_v10 = vadd.f32 %v6319_v16, %v1564_v9  ;;  %v1566_v37 = vpop.f32.mrb[37].mxu0 }
 0x2f7   :  { %v1718_v49 = vadd.f32 %v6323_v17, %v1566_v37  ;;  %v1568_v53 = vpop.f32.mrb[38].mxu0  ;;  %4575 = vmatprep.mubr.msk.bf16.mxu1 %vm1905_vm2, %v6463_v7 }
 0x2f8   :  { %v1719_v57 = vadd.f32 %v6319_v16, %v1568_v53  ;;  %v1570_v3 = vpop.f32.mrb[39].mxu0  ;;  %2049 = vmatmul.mubr.bf16.gmra.mrb[32].mxu1 %v6461_v30  ;;  %v1773_v8 = vmax.f32 %v1717_v10, 0.0 }
 0x2f9   :  { %v1720_v5 = vadd.f32 %v6323_v17, %v1570_v3  ;;  %v1774_v19 = vmax.f32 %v1718_v49, 0.0 }
 0x2fa   :  { %v1775_v12 = vmax.f32 %v1719_v57, 0.0 }
 0x2fb   :  { %v1776_v27 = vmax.f32 %v1720_v5, 0.0 }
 0x2fc   :  { %v6472_v36 = vpack.c.bf16 %v1775_v12, %v1773_v8 }
 0x2fd   :  { %v6474_v43 = vpack.c.bf16 %v1776_v27, %v1774_v19  ;;  %v1574_v48 = vpop.f32.mrb[40].mxu0 }
 0x2fe   :  { %v1721_v52 = vadd.f32 %v6319_v16, %v1574_v48  ;;  %v1576_v20 = vpop.f32.mrb[41].mxu0 }
 0x2ff   :  { %v1722_v21 = vadd.f32 %v6323_v17, %v1576_v20  ;;  %v1578_v23 = vpop.f32.mrb[42].mxu0  ;;  %4576 = vmatprep.mubr.msk.bf16.mxu1 %vm1905_vm2, %v6474_v43 }
 0x300   :  { %v1723_v24 = vadd.f32 %v6319_v16, %v1578_v23  ;;  %v1580_v25 = vpop.f32.mrb[43].mxu0  ;;  %2057 = vmatmul.mubr.bf16.gmra.mrb[36].mxu1 %v6472_v36  ;;  %v1777_v28 = vmax.f32 %v1721_v52, 0.0 }
 0x301   :  { %v1724_v26 = vadd.f32 %v6323_v17, %v1580_v25  ;;  %v1778_v31 = vmax.f32 %v1722_v21, 0.0 }
 0x302   :  { %v1779_v29 = vmax.f32 %v1723_v24, 0.0 }
 0x303   :  { %v1780_v32 = vmax.f32 %v1724_v26, 0.0 }
 0x304   :  { %v6483_v34 = vpack.c.bf16 %v1779_v29, %v1777_v28 }
 0x305   :  { %v6485_v38 = vpack.c.bf16 %v1780_v32, %v1778_v31  ;;  %v1584_v41 = vpop.f32.mrb[44].mxu0 }
 0x306   :  { %v1725_v42 = vadd.f32 %v6319_v16, %v1584_v41  ;;  %v1586_v46 = vpop.f32.mrb[45].mxu0 }
 0x307   :  { %v1726_v47 = vadd.f32 %v6323_v17, %v1586_v46  ;;  %v1588_v50 = vpop.f32.mrb[46].mxu0  ;;  %4577 = vmatprep.mubr.msk.bf16.mxu1 %vm1905_vm2, %v6485_v38 }
 0x308   :  { %v1727_v51 = vadd.f32 %v6319_v16, %v1588_v50  ;;  %v1590_v54 = vpop.f32.mrb[47].mxu0  ;;  %2065 = vmatmul.mubr.bf16.gmra.mrb[40].mxu1 %v6483_v34  ;;  %v1781_v62 = vmax.f32 %v1725_v42, 0.0 }
 0x309   :  { %v1728_v55 = vadd.f32 %v6323_v17, %v1590_v54  ;;  %v1782_v4 = vmax.f32 %v1726_v47, 0.0 }
 0x30a   :  { %v1783_v63 = vmax.f32 %v1727_v51, 0.0 }
 0x30b   :  { %v1784_v6 = vmax.f32 %v1728_v55, 0.0 }
 0x30c   :  { %v6494_v9 = vpack.c.bf16 %v1783_v63, %v1781_v62 }
 0x30d   :  { %v6496_v10 = vpack.c.bf16 %v1784_v6, %v1782_v4  ;;  %v1594_v37 = vpop.f32.mrb[48].mxu0 }
 0x30e   :  { %v1729_v49 = vadd.f32 %v6319_v16, %v1594_v37  ;;  %v1596_v53 = vpop.f32.mrb[49].mxu0 }
 0x30f   :  { %v1730_v57 = vadd.f32 %v6323_v17, %v1596_v53  ;;  %v1598_v3 = vpop.f32.mrb[50].mxu0  ;;  %4578 = vmatprep.mubr.msk.bf16.mxu1 %vm1905_vm2, %v6496_v10 }
 0x310   :  { %v1731_v5 = vadd.f32 %v6319_v16, %v1598_v3  ;;  %v1600_v8 = vpop.f32.mrb[51].mxu0  ;;  %2073 = vmatmul.mubr.bf16.gmra.mrb[44].mxu1 %v6494_v9  ;;  %v1785_v19 = vmax.f32 %v1729_v49, 0.0 }
 0x311   :  { %v1732_v12 = vadd.f32 %v6323_v17, %v1600_v8  ;;  %v1786_v48 = vmax.f32 %v1730_v57, 0.0 }
 0x312   :  { %v1787_v27 = vmax.f32 %v1731_v5, 0.0 }
 0x313   :  { %v1788_v52 = vmax.f32 %v1732_v12, 0.0 }
 0x314   :  { %v1817_v20 = vpack.c.bf16 %v1787_v27, %v1785_v19 }
 0x315   :  { %v1818_v21 = vpack.c.bf16 %v1788_v52, %v1786_v48  ;;  %v1604_v23 = vpop.f32.mrb[52].mxu0  ;;  %v5486_v48 = vld [vmem:[%s7262_s5 + $0x4] ss:$8 sps:$4 sm:$0xff]  }
 0x316   :  { %v1733_v24 = vadd.f32 %v6319_v16, %v1604_v23  ;;  %v1606_v25 = vpop.f32.mrb[53].mxu0 }
 0x317   :  { %v1734_v26 = vadd.f32 %v6323_v17, %v1606_v25  ;;  %v1608_v28 = vpop.f32.mrb[54].mxu0  ;;  %4579 = vmatprep.mubr.msk.bf16.mxu1 %vm1905_vm2, %v1818_v21 }
 0x318   :  { %v1735_v29 = vadd.f32 %v6319_v16, %v1608_v28  ;;  %v1610_v31 = vpop.f32.mrb[55].mxu0  ;;  %2081 = vmatmul.mubr.bf16.gmra.mrb[48].mxu1 %v1817_v20  ;;  %v1789_v41 = vmax.f32 %v1733_v24, 0.0  ;;  %v5467_v16 = vld [vmem:[%s7262_s5 + $0x58] ss:$8 sps:$4 sm:$0xff]  }
 0x319   :  { %v1736_v32 = vadd.f32 %v6323_v17, %v1610_v31  ;;  %v1790_v46 = vmax.f32 %v1734_v26, 0.0  ;;  %v5469_v17 = vld [vmem:[%s7262_s5 + $0x5c] ss:$8 sps:$4 sm:$0xff]  }
 0x31a   :  { %v1791_v42 = vmax.f32 %v1735_v29, 0.0  ;;  %2497 = vmatprep.subr.bf16.mxu1 %v5469_v17 }
 0x31b   :  { %v1792_v47 = vmax.f32 %v1736_v32, 0.0 }
 0x31c   :  { %v1819_v50 = vpack.c.bf16 %v1791_v42, %v1789_v41 }
 0x31d   :  { %v1820_v51 = vpack.c.bf16 %v1792_v47, %v1790_v46 }
 0x31f   :  { %4580 = vmatprep.mubr.msk.bf16.mxu1 %vm1905_vm2, %v1820_v51 }
 0x320   :  { %2089 = vmatmul.mubr.bf16.gmra.mrb[52].mxu1 %v1819_v50 }
 0x321   :  { %4592 = vmatprep.mubr.msk.bf16.mxu1 %vm1905_vm2, %v6331_v35  ;;  %v5472_v35 = vld [vmem:[%s7262_s5 + $0x6c] ss:$8 sps:$4 sm:$0xff]  }
 0x328   :  { %2217 = vmatmul.mubr.bf16.vlgmr.msra.gmra.mrb[56].mxu1 %v6329_v33  ;;  %v5470_v33 = vld [vmem:[%s7262_s5 + $0x68] ss:$8 sps:$4 sm:$0xff]  }
 0x329   :  { %4593 = vmatprep.mubr.msk.bf16.mxu1 %vm1905_vm2, %v6349_v59  ;;  %2498 = vmatpush1.bf16.msra.mxu1 %v5467_v16  ;;  %v5475_v59 = vld [vmem:[%s7262_s5 + $0x7c] ss:$8 sps:$4 sm:$0xff]  }
 0x32a   :  { %2499 = vmatprep.subr.bf16.mxu1 %v5472_v35 }
 0x32d   :  { %2500 = vmatpush1.bf16.msra.mxu1 %v5470_v33 }
 0x32e   :  { %2501 = vmatprep.subr.bf16.mxu1 %v5475_v59 }
 0x330   :  { %2225 = vmatmul.mubr.bf16.gmra.mrb[60].mxu1 %v6347_v58  ;;  %v5473_v58 = vld [vmem:[%s7262_s5 + $0x78] ss:$8 sps:$4 sm:$0xff]  }
 0x331   :  { %4594 = vmatprep.mubr.msk.bf16.mxu1 %vm1905_vm2, %v6368_v2  ;;  %2502 = vmatpush1.bf16.msra.mxu1 %v5473_v58 }
 0x338   :  { %2233 = vmatmul.mubr.bf16.gmra.mrb[64].mxu1 %v6366_v61 }
 0x339   :  { %4595 = vmatprep.mubr.msk.bf16.mxu1 %vm1905_vm2, %v6387_v18  ;;  %v5478_v18 = vld [vmem:[%s7262_s5 + $0x8c] ss:$8 sps:$4 sm:$0xff]  }
 0x33a   :  { %2503 = vmatprep.subr.bf16.mxu1 %v5478_v18 }
 0x340   :  { %2241 = vmatmul.mubr.bf16.gmra.mrb[68].mxu1 %v6385_v22  ;;  %v5476_v22 = vld [vmem:[%s7262_s5 + $0x88] ss:$8 sps:$4 sm:$0xff]  }
 0x341   :  { %4596 = vmatprep.mubr.msk.bf16.mxu1 %vm1905_vm2, %v6406_v44  ;;  %2504 = vmatpush1.bf16.msra.mxu1 %v5476_v22 }
 0x348   :  { %2249 = vmatmul.mubr.bf16.gmra.mrb[72].mxu1 %v6404_v11 }
 0x349   :  { %4597 = vmatprep.mubr.msk.bf16.mxu1 %vm1905_vm2, %v6428_v45 }
 0x350   :  { %2257 = vmatmul.mubr.bf16.gmra.mrb[76].mxu1 %v6426_v13 }
 0x351   :  { %4598 = vmatprep.mubr.msk.bf16.mxu1 %vm1905_vm2, %v6441_v14  ;;  %v5481_v14 = vld [vmem:[%s7262_s5 + $0x9c] ss:$8 sps:$4 sm:$0xff]  }
 0x352   :  { %2505 = vmatprep.subr.bf16.mxu1 %v5481_v14 }
 0x358   :  { %2265 = vmatmul.mubr.bf16.gmra.mrb[80].mxu1 %v6439_v56 }
 0x359   :  { %4599 = vmatprep.mubr.msk.bf16.mxu1 %vm1905_vm2, %v6452_v40  ;;  %v5479_v40 = vld [vmem:[%s7262_s5 + $0x98] ss:$8 sps:$4 sm:$0xff]  }
 0x35a   :  { %2506 = vmatpush1.bf16.msra.mxu1 %v5479_v40 }
 0x360   :  { %2273 = vmatmul.mubr.bf16.gmra.mrb[84].mxu1 %v6450_v39 }
 0x361   :  { %4600 = vmatprep.mubr.msk.bf16.mxu1 %vm1905_vm2, %v6463_v7 }
 0x368   :  { %2281 = vmatmul.mubr.bf16.gmra.mrb[88].mxu1 %v6461_v30  ;;  %v4616_v30 = vld [vmem:[%s7262_s5 + $0xa8] sm:$0x33] }
 0x369   :  { %4601 = vmatprep.mubr.msk.bf16.mxu1 %vm1905_vm2, %v6474_v43  ;;  %v4628_v7 = vcombine.high %v4616_v30, %v4616_v30 }
 0x36b   :  { %4629 = vmatprep.subr.msk.bf16.mxu1 %vm2490_vm3, %v4628_v7 }
 0x370   :  { %2289 = vmatmul.mubr.bf16.gmra.mrb[92].mxu1 %v6472_v36  ;;  %v4627_v36 = vcombine.low %v4616_v30, %v4616_v30 }
 0x371   :  { %4602 = vmatprep.mubr.msk.bf16.mxu1 %vm1905_vm2, %v6485_v38 }
 0x378   :  { %2297 = vmatmul.mubr.bf16.gmra.mrb[96].mxu1 %v6483_v34  ;;  %v2492_v34 = vsel %vm2490_vm3, %v4627_v36, 0 }
 0x379   :  { %4603 = vmatprep.mubr.msk.bf16.mxu1 %vm1905_vm2, %v6496_v10  ;;  %2508 = vmatpush1.bf16.msra.mxu1 %v2492_v34 }
 0x37a   :  { %2656 = vmatprep.subr.bf16.mxu1 %v5486_v48 }
 0x380   :  { %2305 = vmatmul.mubr.bf16.gmra.mrb[100].mxu1 %v6494_v9 }
 0x381   :  { %4604 = vmatprep.mubr.msk.bf16.mxu1 %vm1905_vm2, %v1818_v21 }
 0x388   :  { %2313 = vmatmul.mubr.bf16.gmra.mrb[104].mxu1 %v1817_v20 }
 0x389   :  { %4605 = vmatprep.mubr.msk.bf16.mxu1 %vm1905_vm2, %v1820_v51 }
 0x38b   :  { %v6567_v61 = vpop.f32.mrb[0].mxu1 }
 0x38c   :  { %v1988_v2 = vpop.f32.mrb[1].mxu1 }
 0x38d   :  { %v6575_v11 = vpop.f32.mrb[2].mxu1 }
 0x38e   :  { %v1991_v44 = vpop.f32.mrb[3].mxu1 }
 0x390   :  { %2321 = vmatmul.mubr.bf16.gmra.mrb[108].mxu1 %v1819_v50 }
 0x391   :  { %2529 = vmatprep.mubr.bf16.mxu1 %v5613_v1 }
 0x393   :  { %v6578_v13 = vpop.f32.mrb[4].mxu1 }
 0x394   :  { %v1996_v45 = vpop.f32.mrb[5].mxu1 }
 0x395   :  { %v6580_v56 = vpop.f32.mrb[6].mxu1 }
 0x396   :  { %v1999_v39 = vpop.f32.mrb[7].mxu1 }
 0x39b   :  { %v6591_v43 = vpop.f32.mrb[8].mxu1 }
 0x39c   :  { %v2004_v38 = vpop.f32.mrb[9].mxu1 }
 0x39d   :  { %v6595_v54 = vpop.f32.mrb[10].mxu1 }
 0x39e   :  { %v2007_v55 = vpop.f32.mrb[11].mxu1 }
 0x3a3   :  { %v6597_v62 = vpop.f32.mrb[12].mxu1 }
 0x3a4   :  { %v2012_v63 = vpop.f32.mrb[13].mxu1 }
 0x3a5   :  { %v6599_v4 = vpop.f32.mrb[14].mxu1 }
 0x3a6   :  { %v2015_v6 = vpop.f32.mrb[15].mxu1 }
 0x3ab   :  { %v6601_v9 = vpop.f32.mrb[16].mxu1 }
 0x3ac   :  { %v2020_v10 = vpop.f32.mrb[17].mxu1 }
 0x3ad   :  { %v6603_v37 = vpop.f32.mrb[18].mxu1 }
 0x3ae   :  { %v2023_v49 = vpop.f32.mrb[19].mxu1 }
 0x3b3   :  { %v6605_v53 = vpop.f32.mrb[20].mxu1 }
 0x3b4   :  { %v2028_v57 = vpop.f32.mrb[21].mxu1 }
 0x3b5   :  { %v6607_v3 = vpop.f32.mrb[22].mxu1 }
 0x3b6   :  { %v2031_v5 = vpop.f32.mrb[23].mxu1 }
 0x3bb   :  { %v6609_v8 = vpop.f32.mrb[24].mxu1 }
 0x3bc   :  { %v2036_v12 = vpop.f32.mrb[25].mxu1 }
 0x3bd   :  { %v6611_v19 = vpop.f32.mrb[26].mxu1 }
 0x3be   :  { %v2039_v27 = vpop.f32.mrb[27].mxu1 }
 0x3c3   :  { %v6616_v52 = vpop.f32.mrb[28].mxu1 }
 0x3c4   :  { %v2044_v20 = vpop.f32.mrb[29].mxu1 }
 0x3c5   :  { %v6618_v21 = vpop.f32.mrb[30].mxu1 }
 0x3c6   :  { %v2047_v23 = vpop.f32.mrb[31].mxu1 }
 0x3cb   :  { %v6620_v24 = vpop.f32.mrb[32].mxu1 }
 0x3cc   :  { %v2052_v25 = vpop.f32.mrb[33].mxu1 }
 0x3cd   :  { %v6622_v26 = vpop.f32.mrb[34].mxu1 }
 0x3ce   :  { %v2055_v28 = vpop.f32.mrb[35].mxu1 }
 0x3d3   :  { %v6624_v29 = vpop.f32.mrb[36].mxu1 }
 0x3d4   :  { %v2060_v31 = vpop.f32.mrb[37].mxu1 }
 0x3d5   :  { %v6626_v32 = vpop.f32.mrb[38].mxu1 }
 0x3d6   :  { %v2063_v41 = vpop.f32.mrb[39].mxu1 }
 0x3db   :  { %v6628_v42 = vpop.f32.mrb[40].mxu1 }
 0x3dc   :  { %v2068_v46 = vpop.f32.mrb[41].mxu1 }
 0x3dd   :  { %v6630_v47 = vpop.f32.mrb[42].mxu1 }
 0x3de   :  { %v2071_v50 = vpop.f32.mrb[43].mxu1 }
 0x3e3   :  { %v6632_v51 = vpop.f32.mrb[44].mxu1 }
 0x3e4   :  { %v2076_v16 = vpop.f32.mrb[45].mxu1 }
 0x3e5   :  { %v6634_v17 = vpop.f32.mrb[46].mxu1 }
 0x3e6   :  { %v2079_v33 = vpop.f32.mrb[47].mxu1 }
 0x3eb   :  { %v6636_v35 = vpop.f32.mrb[48].mxu1 }
 0x3ec   :  { %v2084_v58 = vpop.f32.mrb[49].mxu1 }
 0x3ed   :  { %v6638_v59 = vpop.f32.mrb[50].mxu1 }
 0x3ee   :  { %v2087_v2 = vpop.f32.mrb[51].mxu1 }
 0x3f3   :  { %v6640_v22 = vpop.f32.mrb[52].mxu1 }
 0x3f4   :  { %v2092_v18 = vpop.f32.mrb[53].mxu1 }
 0x3f5   :  { %v6642_v44 = vpop.f32.mrb[54].mxu1 }
 0x3f6   :  { %v2095_v45 = vpop.f32.mrb[55].mxu1 }
 0x3fb   :  { %v2218_v14 = vpop.f32.mrb[56].mxu1 }
 0x3fc   :  { %v2329_v39 = vmax.f32 %v6567_v61, %v2218_v14  ;;  %v2220_v40 = vpop.f32.mrb[57].mxu1 }
 0x3fd   :  { %v2221_v30 = vpop.f32.mrb[58].mxu1  ;;  %v5492_v40 = vld [vmem:[%s7262_s5 + $0x24] ss:$8 sps:$4 sm:$0xff]  }
 0x3fe   :  { %v2330_v7 = vmax.f32 %v6575_v11, %v2221_v30  ;;  %v2223_v36 = vpop.f32.mrb[59].mxu1 }
 0x3ff   :  { %v5490_v36 = vld [vmem:[%s7262_s5 + $0x20] ss:$8 sps:$4 sm:$0xff]  }
 0x400   :  { %v2357_v34 = vmax.f32 %v2329_v39, %v2330_v7 }
 0x403   :  { %v2226_v38 = vpop.f32.mrb[60].mxu1 }
 0x404   :  { %v2331_v55 = vmax.f32 %v6578_v13, %v2226_v38  ;;  %v2228_v63 = vpop.f32.mrb[61].mxu1  ;;  %v5495_v38 = vld [vmem:[%s7262_s5 + $0x34] ss:$8 sps:$4 sm:$0xff]  }
 0x405   :  { %v2229_v6 = vpop.f32.mrb[62].mxu1 }
 0x406   :  { %v2332_v10 = vmax.f32 %v6580_v56, %v2229_v6  ;;  %v2231_v49 = vpop.f32.mrb[63].mxu1 }
 0x408   :  { %v2358_v57 = vmax.f32 %v2331_v55, %v2332_v10  ;;  %v5498_v10 = vld [vmem:[%s7262_s5 + $0x44] ss:$8 sps:$4 sm:$0xff]  }
 0x40a   :  { %v6648_v5 = vpack.c.bf16 %v2358_v57, %v2357_v34  ;;  %v2388_v57 = vld [vmem:[%s7262_s5 + $0x50] sm:$0x33] }
 0x40b   :  { %v2234_v12 = vpop.f32.mrb[64].mxu1 }
 0x40c   :  { %v2333_v61 = vmax.f32 %v6591_v43, %v2234_v12  ;;  %v2236_v27 = vpop.f32.mrb[65].mxu1  ;;  %v2408_v43 = vrot.slane %v6648_v5, 4 }
 0x40d   :  { %v2237_v48 = vpop.f32.mrb[66].mxu1 }
 0x40e   :  { %v2334_v11 = vmax.f32 %v6595_v54, %v2237_v48  ;;  %v2239_v20 = vpop.f32.mrb[67].mxu1  ;;  %v5496_v48 = vld [vmem:[%s7262_s5 + $0x40] ss:$8 sps:$4 sm:$0xff]  }
 0x40f   :  { %v4646_v20 = vcombine.high %v2388_v57, %v2388_v57 }
 0x410   :  { %v2359_v23 = vmax.f32 %v2333_v61, %v2334_v11 }
 0x413   :  { %v2242_v25 = vpop.f32.mrb[68].mxu1 }
 0x414   :  { %v2335_v13 = vmax.f32 %v6597_v62, %v2242_v25  ;;  %v2244_v28 = vpop.f32.mrb[69].mxu1  ;;  %v5484_v62 = vld [vmem:[%s7262_s5] ss:$8 sps:$4 sm:$0xff]  }
 0x415   :  { %v2245_v31 = vpop.f32.mrb[70].mxu1 }
 0x416   :  { %v2336_v56 = vmax.f32 %v6599_v4, %v2245_v31  ;;  %v2247_v41 = vpop.f32.mrb[71].mxu1  ;;  %v5489_v4 = vld [vmem:[%s7262_s5 + $0x14] ss:$8 sps:$4 sm:$0xff]  }
 0x418   :  { %v2360_v46 = vmax.f32 %v2335_v13, %v2336_v56  ;;  %v5503_v56 = vld [vmem:[%s7262_s5 + $0xb4] ss:$8 sps:$4 sm:$0xff]  }
 0x41a   :  { %v6654_v50 = vpack.c.bf16 %v2360_v46, %v2359_v23  ;;  %v4645_v23 = vcombine.low %v2388_v57, %v2388_v57 }
 0x41b   :  { %v2250_v16 = vpop.f32.mrb[72].mxu1 }
 0x41c   :  { %v2409_v33 = vrot.slane %v6654_v50, 4  ;;  %v2337_v54 = vmax.f32 %v6601_v9, %v2250_v16  ;;  %v2252_v58 = vpop.f32.mrb[73].mxu1  ;;  %v5487_v9 = vld [vmem:[%s7262_s5 + $0x10] ss:$8 sps:$4 sm:$0xff]   ;;  %v2651_v31 = vsel %vm2490_vm3, %v4645_v23, 0 }
 0x41d   :  { %v2253_v2 = vpop.f32.mrb[74].mxu1 }
 0x41e   :  { %v2338_v18 = vmax.f32 %v6603_v37, %v2253_v2  ;;  %v2255_v45 = vpop.f32.mrb[75].mxu1  ;;  %v2410_v14 = vsel %vm1948_vm1, %v2408_v43, %v2409_v33 }
 0x41f   :  { %4630 = vmatmul.mubr.msk.bf16.vlgmr.msra.gmra.mrb[112].mxu1 %vm2474_vm4, %v2410_v14 }
 0x420   :  { %v2361_v39 = vmax.f32 %v2337_v54, %v2338_v18  ;;  %2539 = vmatprep.mubr.bf16.mxu1 %v5613_v1  ;;  %2657 = vmatpush1.bf16.msra.mxu1 %v5484_v62 }
 0x421   :  { %2658 = vmatprep.subr.bf16.mxu1 %v5489_v4 }
 0x423   :  { %v2258_v30 = vpop.f32.mrb[76].mxu1 }
 0x424   :  { %v2339_v37 = vmax.f32 %v6605_v53, %v2258_v30  ;;  %v2260_v7 = vpop.f32.mrb[77].mxu1  ;;  %2659 = vmatpush1.bf16.msra.mxu1 %v5487_v9  ;;  %v5493_v53 = vld [vmem:[%s7262_s5 + $0x30] ss:$8 sps:$4 sm:$0xff]  }
 0x425   :  { %v2261_v34 = vpop.f32.mrb[78].mxu1  ;;  %2660 = vmatprep.subr.bf16.mxu1 %v5492_v40 }
 0x426   :  { %v2340_v55 = vmax.f32 %v6607_v3, %v2261_v34  ;;  %v2263_v63 = vpop.f32.mrb[79].mxu1 }
 0x428   :  { %v2362_v6 = vmax.f32 %v2339_v37, %v2340_v55  ;;  %2661 = vmatpush1.bf16.msra.mxu1 %v5490_v36 }
 0x429   :  { %2662 = vmatprep.subr.bf16.mxu1 %v5495_v38 }
 0x42a   :  { %v6689_v49 = vpack.c.bf16 %v2362_v6, %v2361_v39 }
 0x42b   :  { %v2266_v12 = vpop.f32.mrb[80].mxu1 }
 0x42c   :  { %v2341_v3 = vmax.f32 %v6609_v8, %v2266_v12  ;;  %v2268_v61 = vpop.f32.mrb[81].mxu1  ;;  %v2411_v27 = vrot.slane %v6689_v49, 4  ;;  %2663 = vmatpush1.bf16.msra.mxu1 %v5493_v53 }
 0x42d   :  { %v2269_v11 = vpop.f32.mrb[82].mxu1  ;;  %2664 = vmatprep.subr.bf16.mxu1 %v5498_v10 }
 0x42e   :  { %v2342_v25 = vmax.f32 %v6611_v19, %v2269_v11  ;;  %v2271_v13 = vpop.f32.mrb[83].mxu1  ;;  %v6701_v28 = vsel %vm1948_vm1, %v2409_v33, %v2411_v27 }
 0x42f   :  { %4631 = vmatmul.mubr.msk.bf16.gmra.mrb[116].mxu1 %vm2474_vm4, %v6701_v28 }
 0x430   :  { %v2363_v8 = vmax.f32 %v2341_v3, %v2342_v25  ;;  %2549 = vmatprep.mubr.bf16.mxu1 %v5613_v1  ;;  %2665 = vmatpush1.bf16.msra.mxu1 %v5496_v48 }
 0x431   :  { %4647 = vmatprep.subr.msk.bf16.mxu1 %vm2490_vm3, %v4646_v20 }
 0x433   :  { %v2274_v19 = vpop.f32.mrb[84].mxu1 }
 0x434   :  { %v2343_v41 = vmax.f32 %v6616_v52, %v2274_v19  ;;  %v2276_v46 = vpop.f32.mrb[85].mxu1  ;;  %2667 = vmatpush1.bf16.msra.mxu1 %v2651_v31 }
 0x435   :  { %v2277_v16 = vpop.f32.mrb[86].mxu1  ;;  %2815 = vmatprep.subr.bf16.mxu1 %v5503_v56 }
 0x436   :  { %v2344_v43 = vmax.f32 %v6618_v21, %v2277_v16  ;;  %v2279_v33 = vpop.f32.mrb[87].mxu1 }
 0x438   :  { %v2364_v54 = vmax.f32 %v2343_v41, %v2344_v43  ;;  %v5501_v41 = vld [vmem:[%s7262_s5 + $0xb0] ss:$8 sps:$4 sm:$0xff]  }
 0x43a   :  { %v6713_v58 = vpack.c.bf16 %v2364_v54, %v2363_v8  ;;  %v5509_v54 = vld [vmem:[%s7262_s5 + $0xd4] ss:$8 sps:$4 sm:$0xff]  }
 0x43b   :  { %v2282_v62 = vpop.f32.mrb[88].mxu1 }
 0x43c   :  { %v2345_v2 = vmax.f32 %v6620_v24, %v2282_v62  ;;  %v2284_v4 = vpop.f32.mrb[89].mxu1  ;;  %v2413_v18 = vrot.slane %v6713_v58, 4 }
 0x43d   :  { %v2285_v45 = vpop.f32.mrb[90].mxu1 }
 0x43e   :  { %v2346_v14 = vmax.f32 %v6622_v26, %v2285_v45  ;;  %v2287_v52 = vpop.f32.mrb[91].mxu1  ;;  %v6719_v39 = vsel %vm1948_vm1, %v2411_v27, %v2413_v18  ;;  %v5515_v45 = vld [vmem:[%s7262_s5 + $0xf4] ss:$8 sps:$4 sm:$0xff]  }
 0x43f   :  { %4632 = vmatmul.mubr.msk.bf16.gmra.mrb[120].mxu1 %vm2474_vm4, %v6719_v39  ;;  %v5513_v52 = vld [vmem:[%s7262_s5 + $0xf0] ss:$8 sps:$4 sm:$0xff]  }
 0x440   :  { %v2365_v21 = vmax.f32 %v2345_v2, %v2346_v14  ;;  %2559 = vmatprep.mubr.bf16.mxu1 %v5613_v1  ;;  %v5512_v2 = vld [vmem:[%s7262_s5 + $0xe4] ss:$8 sps:$4 sm:$0xff]  }
 0x441   :  { %v4663_v14 = vld [vmem:[%s7262_s5 + $0x100] sm:$0x33] }
 0x443   :  { %v2290_v9 = vpop.f32.mrb[92].mxu1 }
 0x444   :  { %v2347_v40 = vmax.f32 %v6624_v29, %v2290_v9  ;;  %v2292_v24 = vpop.f32.mrb[93].mxu1  ;;  %v4674_v9 = vcombine.low %v4663_v14, %v4663_v14 }
 0x445   :  { %v2293_v30 = vpop.f32.mrb[94].mxu1  ;;  %v5520_v24 = vld [vmem:[%s7262_s5 + $0x10c] ss:$8 sps:$4 sm:$0xff]  }
 0x446   :  { %v2348_v37 = vmax.f32 %v6626_v32, %v2293_v30  ;;  %v2295_v7 = vpop.f32.mrb[95].mxu1  ;;  %v5518_v30 = vld [vmem:[%s7262_s5 + $0x108] ss:$8 sps:$4 sm:$0xff]  }
 0x447   :  { %v5521_v7 = vld [vmem:[%s7262_s5 + $0x118] ss:$8 sps:$4 sm:$0xff]  }
 0x448   :  { %v2366_v36 = vmax.f32 %v2347_v40, %v2348_v37  ;;  %v2810_v40 = vsel %vm2490_vm3, %v4674_v9, 0  ;;  %v5523_v37 = vld [vmem:[%s7262_s5 + $0x11c] ss:$8 sps:$4 sm:$0xff]  }
 0x44a   :  { %v6726_v26 = vpack.c.bf16 %v2366_v36, %v2365_v21  ;;  %v4675_v21 = vcombine.high %v4663_v14, %v4663_v14  ;;  %v5526_v36 = vld [vmem:[%s7262_s5 + $0x12c] ss:$8 sps:$4 sm:$0xff]  }
 0x44b   :  { %v2298_v34 = vpop.f32.mrb[96].mxu1 }
 0x44c   :  { %v2349_v38 = vmax.f32 %v6628_v42, %v2298_v34  ;;  %v2300_v55 = vpop.f32.mrb[97].mxu1  ;;  %v2415_v63 = vrot.slane %v6726_v26, 4  ;;  %v5524_v34 = vld [vmem:[%s7262_s5 + $0x128] ss:$8 sps:$4 sm:$0xff]  }
 0x44d   :  { %v2301_v6 = vpop.f32.mrb[98].mxu1  ;;  %v5532_v55 = vld [vmem:[%s7262_s5 + $0x14c] ss:$8 sps:$4 sm:$0xff]  }
 0x44e   :  { %v2350_v53 = vmax.f32 %v6630_v47, %v2301_v6  ;;  %v2303_v10 = vpop.f32.mrb[99].mxu1  ;;  %v6732_v29 = vsel %vm1948_vm1, %v2413_v18, %v2415_v63  ;;  %v5510_v18 = vld [vmem:[%s7262_s5 + $0xe0] ss:$8 sps:$4 sm:$0xff]  }
 0x44f   :  { %4633 = vmatmul.mubr.msk.bf16.gmra.mrb[124].mxu1 %vm2474_vm4, %v6732_v29  ;;  %v5530_v6 = vld [vmem:[%s7262_s5 + $0x148] ss:$8 sps:$4 sm:$0xff]  }
 0x450   :  { %v2367_v32 = vmax.f32 %v2349_v38, %v2350_v53  ;;  %2569 = vmatprep.mubr.bf16.mxu1 %v5613_v1  ;;  %v5527_v38 = vld [vmem:[%s7262_s5 + $0x138] ss:$8 sps:$4 sm:$0xff]  }
 0x453   :  { %v2306_v57 = vpop.f32.mrb[100].mxu1 }
 0x454   :  { %v2351_v12 = vmax.f32 %v6632_v51, %v2306_v57  ;;  %v2308_v42 = vpop.f32.mrb[101].mxu1  ;;  %v5537_v57 = vld [vmem:[%s7262_s5 + $0x164] ss:$8 sps:$4 sm:$0xff]  }
 0x455   :  { %v2309_v3 = vpop.f32.mrb[102].mxu1  ;;  %v5540_v42 = vld [vmem:[%s7262_s5 + $0x174] ss:$8 sps:$4 sm:$0xff]  }
 0x456   :  { %v2352_v61 = vmax.f32 %v6634_v17, %v2309_v3  ;;  %v2311_v27 = vpop.f32.mrb[103].mxu1  ;;  %v5538_v3 = vld [vmem:[%s7262_s5 + $0x170] ss:$8 sps:$4 sm:$0xff]  }
 0x457   :  { %v5541_v27 = vld [vmem:[%s7262_s5 + $0x180] ss:$8 sps:$4 sm:$0xff]  }
 0x458   :  { %v2368_v48 = vmax.f32 %v2351_v12, %v2352_v61  ;;  %v5535_v12 = vld [vmem:[%s7262_s5 + $0x160] ss:$8 sps:$4 sm:$0xff]   ;;  %v5543_v61 = vld [vmem:[%s7262_s5 + $0x184] ss:$8 sps:$4 sm:$0xff]  }
 0x45a   :  { %v6739_v47 = vpack.c.bf16 %v2368_v48, %v2367_v32  ;;  %v5544_v48 = vld [vmem:[%s7262_s5 + $0x190] ss:$8 sps:$4 sm:$0xff]  }
 0x45b   :  { %v2314_v11 = vpop.f32.mrb[104].mxu1 }
 0x45c   :  { %v2353_v20 = vmax.f32 %v6636_v35, %v2314_v11  ;;  %v2316_v23 = vpop.f32.mrb[105].mxu1  ;;  %v2417_v25 = vrot.slane %v6739_v47, 4  ;;  %v5549_v11 = vld [vmem:[%s7262_s5 + $0x1a4] ss:$8 sps:$4 sm:$0xff]  }
 0x45d   :  { %v2317_v13 = vpop.f32.mrb[106].mxu1 }
 0x45e   :  { %v2354_v8 = vmax.f32 %v6638_v59, %v2317_v13  ;;  %v2319_v31 = vpop.f32.mrb[107].mxu1  ;;  %v6745_v51 = vsel %vm1948_vm1, %v2415_v63, %v2417_v25  ;;  %v5506_v59 = vld [vmem:[%s7262_s5 + $0xc4] ss:$8 sps:$4 sm:$0xff]   ;;  %v4692_v63 = vld [vmem:[%s7262_s5 + $0x158] sm:$0x33] }
 0x45f   :  { %4634 = vmatmul.mubr.msk.bf16.gmra.mrb[128].mxu1 %vm2474_vm4, %v6745_v51  ;;  %v4704_v53 = vcombine.high %v4692_v63, %v4692_v63  ;;  %v4703_v10 = vcombine.low %v4692_v63, %v4692_v63  ;;  %v5554_v31 = vld [vmem:[%s7263_s7 + $0x10] sm:$0xff]  }
 0x460   :  { %v2369_v17 = vmax.f32 %v2353_v20, %v2354_v8  ;;  %2688 = vmatprep.mubr.bf16.mxu1 %v5613_v1  ;;  %v4721_v20 = vld [vmem:[%s7262_s5 + $0x1b0] sm:$0x33]  ;;  %v5553_v8 = vld [vmem:[%s7263_s7 + $0x8] sm:$0xff]  }
 0x461   :  { %v2992_v32 = vsel %vm2490_vm3, %v4703_v10, 0  ;;  %v4733_v23 = vcombine.high %v4721_v20, %v4721_v20  ;;  %v5564_v10 = vld [vmem:[%s7264_s8 + $0x10] sm:$0xff]  }
 0x463   :  { %v2322_v56 = vpop.f32.mrb[108].mxu1 }
 0x464   :  { %v2355_v19 = vmax.f32 %v6640_v22, %v2322_v56  ;;  %v2324_v35 = vpop.f32.mrb[109].mxu1  ;;  %v5504_v22 = vld [vmem:[%s7262_s5 + $0xc0] ss:$8 sps:$4 sm:$0xff]  }
 0x465   :  { %v2325_v46 = vpop.f32.mrb[110].mxu1  ;;  %v5560_v56 = vld [vmem:[%s7263_s7 + $0x40] sm:$0xff]   ;;  %v5572_v35 = vld [vmem:[%s7265_s9 + $0x50] sm:$0xff]  }
 0x466   :  { %v2356_v16 = vmax.f32 %v6642_v44, %v2325_v46  ;;  %v2327_v43 = vpop.f32.mrb[111].mxu1  ;;  %v3279_v46 = vld [vmem:[%s7266_s6] sm:$0x3] }
 0x467   :  { %4648 = vmatmul.mubr.msk.bf16.vlgmr.msra.gmra.mrb[112].mxu1 %vm2474_vm4, %v6648_v5  ;;  %v5507_v5 = vld [vmem:[%s7262_s5 + $0xd0] ss:$8 sps:$4 sm:$0xff]  }
 0x468   :  { %v2370_v33 = vmax.f32 %v2355_v19, %v2356_v16  ;;  %2816 = vmatpush1.bf16.msra.mxu1 %v5501_v41  ;;  %2698 = vmatprep.mubr.bf16.mxu1 %v5613_v1  ;;  %v5614_v19 = vmov 0.0   ;;  %v5573_v41 = vld [vmem:[%s7265_s9 + $0x58] sm:$0xff]   ;;  %v6978_v16 = vrot.slane %v3279_v46, %v1677_v15 }
 0x469   :  { %2817 = vmatprep.subr.bf16.mxu1 %v5506_v59  ;;  %4935 = vmatprep.subr.bf16.mxu0 %v5614_v19  ;;  %v6974_v59 = vrot.slane %v3279_v46, %v1673_v0 }
 0x46a   :  { %v6767_v62 = vpack.c.bf16 %v2370_v33, %v2369_v17  ;;  %v5558_v17 = vld [vmem:[%s7263_s7 + $0x30] sm:$0xff]   ;;  %4936 = vmatpush3.bf16.msra.mxu0 %v5572_v35  ;;  %4945 = vmatprep.mubr.msk.bf16.mxu0 %vm5615_vm6, %v5614_v19 }
 0x46b   :  { %4937 = vmatprep.subr.bf16.mxu0 %v5614_v19 }
 0x46c   :  { %v2931_v44 = vrot.slane %v6767_v62, 4  ;;  %2818 = vmatpush1.bf16.msra.mxu1 %v5504_v22 }
 0x46d   :  { %2819 = vmatprep.subr.bf16.mxu1 %v5509_v54 }
 0x46e   :  { %v6777_v4 = vsel %vm1948_vm1, %v2417_v25, %v2931_v44  ;;  %v4732_v25 = vcombine.low %v4721_v20, %v4721_v20  ;;  %4938 = vmatpush3.bf16.msra.mxu0 %v5573_v41 }
 0x46f   :  { %4649 = vmatmul.mubr.msk.bf16.gmra.mrb[116].mxu1 %vm2474_vm4, %v6654_v50  ;;  %4939 = vmatprep.subr.bf16.mxu0 %v5614_v19 }
 0x470   :  { %2708 = vmatprep.mubr.bf16.mxu1 %v5613_v1  ;;  %2820 = vmatpush1.bf16.msra.mxu1 %v5507_v5  ;;  %v3171_v13 = vsel %vm2490_vm3, %v4732_v25, 0 }
 0x471   :  { %2821 = vmatprep.subr.bf16.mxu1 %v5512_v2 }
 0x474   :  { %2822 = vmatpush1.bf16.msra.mxu1 %v5510_v18 }
 0x475   :  { %2823 = vmatprep.subr.bf16.mxu1 %v5515_v45 }
 0x477   :  { %4650 = vmatmul.mubr.msk.bf16.gmra.mrb[120].mxu1 %vm2474_vm4, %v6689_v49 }
 0x478   :  { %2718 = vmatprep.mubr.bf16.mxu1 %v5613_v1  ;;  %2824 = vmatpush1.bf16.msra.mxu1 %v5513_v52  ;;  %v5562_v52 = vld [vmem:[%s7264_s8] sm:$0xff]  }
 0x479   :  { %4676 = vmatprep.subr.msk.bf16.mxu1 %vm2490_vm3, %v4675_v21 }
 0x47c   :  { %2826 = vmatpush1.bf16.msra.mxu1 %v2810_v40 }
 0x47d   :  { %2997 = vmatprep.subr.bf16.mxu1 %v5520_v24 }
 0x47f   :  { %4651 = vmatmul.mubr.msk.bf16.gmra.mrb[124].mxu1 %vm2474_vm4, %v6713_v58 }
 0x480   :  { %2728 = vmatprep.mubr.bf16.mxu1 %v5613_v1 }
 0x487   :  { %4652 = vmatmul.mubr.msk.bf16.gmra.mrb[128].mxu1 %vm2474_vm4, %v6726_v26 }
 0x488   :  { %2847 = vmatprep.mubr.bf16.mxu1 %v5613_v1 }
 0x48f   :  { %4677 = vmatmul.mubr.msk.bf16.vlgmr.msra.gmra.mrb[112].mxu1 %vm2474_vm4, %v6654_v50  ;;  %v5529_v50 = vld [vmem:[%s7262_s5 + $0x13c] ss:$8 sps:$4 sm:$0xff]  }
 0x490   :  { %2998 = vmatpush1.bf16.msra.mxu1 %v5518_v30  ;;  %2857 = vmatprep.mubr.bf16.mxu1 %v5613_v1 }
 0x491   :  { %2999 = vmatprep.subr.bf16.mxu1 %v5523_v37 }
 0x494   :  { %3000 = vmatpush1.bf16.msra.mxu1 %v5521_v7 }
 0x495   :  { %3001 = vmatprep.subr.bf16.mxu1 %v5526_v36  ;;  %v5563_v36 = vld [vmem:[%s7264_s8 + $0x8] sm:$0xff]  }
 0x497   :  { %4678 = vmatmul.mubr.msk.bf16.gmra.mrb[116].mxu1 %vm2474_vm4, %v6689_v49 }
 0x498   :  { %2867 = vmatprep.mubr.bf16.mxu1 %v5613_v1  ;;  %3002 = vmatpush1.bf16.msra.mxu1 %v5524_v34 }
 0x499   :  { %3003 = vmatprep.subr.bf16.mxu1 %v5529_v50 }
 0x49c   :  { %3004 = vmatpush1.bf16.msra.mxu1 %v5527_v38 }
 0x49d   :  { %3005 = vmatprep.subr.bf16.mxu1 %v5532_v55 }
 0x49f   :  { %4679 = vmatmul.mubr.msk.bf16.gmra.mrb[120].mxu1 %vm2474_vm4, %v6713_v58 }
 0x4a0   :  { %2877 = vmatprep.mubr.bf16.mxu1 %v5613_v1  ;;  %3006 = vmatpush1.bf16.msra.mxu1 %v5530_v6 }
 0x4a1   :  { %4705 = vmatprep.subr.msk.bf16.mxu1 %vm2490_vm3, %v4704_v53 }
 0x4a4   :  { %3008 = vmatpush1.bf16.msra.mxu1 %v2992_v32 }
 0x4a5   :  { %3176 = vmatprep.subr.bf16.mxu1 %v5537_v57 }
 0x4a7   :  { %4680 = vmatmul.mubr.msk.bf16.gmra.mrb[124].mxu1 %vm2474_vm4, %v6726_v26 }
 0x4a8   :  { %2887 = vmatprep.mubr.bf16.mxu1 %v5613_v1 }
 0x4af   :  { %4681 = vmatmul.mubr.msk.bf16.gmra.mrb[128].mxu1 %vm2474_vm4, %v6739_v47 }
 0x4b0   :  { %3029 = vmatprep.mubr.bf16.mxu1 %v5613_v1 }
 0x4b7   :  { %4706 = vmatmul.mubr.msk.bf16.vlgmr.msra.gmra.mrb[112].mxu1 %vm2474_vm4, %v6701_v28  ;;  %v5546_v28 = vld [vmem:[%s7262_s5 + $0x194] ss:$8 sps:$4 sm:$0xff]  }
 0x4b8   :  { %3177 = vmatpush1.bf16.msra.mxu1 %v5535_v12  ;;  %3039 = vmatprep.mubr.bf16.mxu1 %v5613_v1 }
 0x4b9   :  { %3178 = vmatprep.subr.bf16.mxu1 %v5540_v42 }
 0x4bc   :  { %3179 = vmatpush1.bf16.msra.mxu1 %v5538_v3 }
 0x4bd   :  { %3180 = vmatprep.subr.bf16.mxu1 %v5543_v61 }
 0x4bf   :  { %4707 = vmatmul.mubr.msk.bf16.gmra.mrb[116].mxu1 %vm2474_vm4, %v6719_v39  ;;  %v5547_v39 = vld [vmem:[%s7262_s5 + $0x1a0] ss:$8 sps:$4 sm:$0xff]  }
 0x4c0   :  { %3049 = vmatprep.mubr.bf16.mxu1 %v5613_v1  ;;  %3181 = vmatpush1.bf16.msra.mxu1 %v5541_v27 }
 0x4c1   :  { %3182 = vmatprep.subr.bf16.mxu1 %v5546_v28  ;;  %v5565_v28 = vld [vmem:[%s7264_s8 + $0x18] sm:$0xff]  }
 0x4c4   :  { %3183 = vmatpush1.bf16.msra.mxu1 %v5544_v48 }
 0x4c5   :  { %3184 = vmatprep.subr.bf16.mxu1 %v5549_v11 }
 0x4c7   :  { %4708 = vmatmul.mubr.msk.bf16.gmra.mrb[120].mxu1 %vm2474_vm4, %v6732_v29  ;;  %v5552_v29 = vld [vmem:[%s7263_s7] sm:$0xff]  }
 0x4c8   :  { %3059 = vmatprep.mubr.bf16.mxu1 %v5613_v1  ;;  %3185 = vmatpush1.bf16.msra.mxu1 %v5547_v39 }
 0x4c9   :  { %4734 = vmatprep.subr.msk.bf16.mxu1 %vm2490_vm3, %v4733_v23 }
 0x4cc   :  { %3187 = vmatpush1.bf16.msra.mxu1 %v3171_v13 }
 0x4cd   :  { %3437 = vmatprep.subr.bf16.mxu1 %v5613_v1 }
 0x4cf   :  { %4709 = vmatmul.mubr.msk.bf16.gmra.mrb[124].mxu1 %vm2474_vm4, %v6745_v51  ;;  %v5556_v51 = vld [vmem:[%s7263_s7 + $0x20] sm:$0xff]  }
 0x4d0   :  { %3069 = vmatprep.mubr.bf16.mxu1 %v5613_v1 }
 0x4d7   :  { %4710 = vmatmul.mubr.msk.bf16.gmra.mrb[128].mxu1 %vm2474_vm4, %v6777_v4 }
 0x4d8   :  { %3208 = vmatprep.mubr.bf16.mxu1 %v5613_v1 }
 0x4df   :  { %4735 = vmatmul.mubr.msk.bf16.vlgmr.msra.gmra.mrb[112].mxu1 %vm2474_vm4, %v6689_v49  ;;  %v5555_v49 = vld [vmem:[%s7263_s7 + $0x18] sm:$0xff]  }
 0x4e0   :  { %3218 = vmatprep.mubr.bf16.mxu1 %v5613_v1  ;;  %3438 = vmatpush1.bf16.msra.mxu1 %v5552_v29  ;;  %v5566_v29 = vld [vmem:[%s7264_s8 + $0x20] sm:$0xff]  }
 0x4e1   :  { %3439 = vmatprep.subr.bf16.mxu1 %v5613_v1 }
 0x4e4   :  { %3440 = vmatpush1.bf16.msra.mxu1 %v5553_v8 }
 0x4e5   :  { %3441 = vmatprep.subr.bf16.mxu1 %v5613_v1 }
 0x4e7   :  { %4736 = vmatmul.mubr.msk.bf16.gmra.mrb[116].mxu1 %vm2474_vm4, %v6713_v58  ;;  %v5557_v58 = vld [vmem:[%s7263_s7 + $0x28] sm:$0xff]  }
 0x4e8   :  { %3228 = vmatprep.mubr.bf16.mxu1 %v5613_v1  ;;  %3442 = vmatpush1.bf16.msra.mxu1 %v5554_v31 }
 0x4e9   :  { %3443 = vmatprep.subr.bf16.mxu1 %v5613_v1 }
 0x4ec   :  { %3444 = vmatpush1.bf16.msra.mxu1 %v5555_v49 }
 0x4ed   :  { %3445 = vmatprep.subr.bf16.mxu1 %v5613_v1 }
 0x4ef   :  { %4737 = vmatmul.mubr.msk.bf16.gmra.mrb[120].mxu1 %vm2474_vm4, %v6726_v26  ;;  %v5559_v26 = vld [vmem:[%s7263_s7 + $0x38] sm:$0xff]  }
 0x4f0   :  { %3238 = vmatprep.mubr.bf16.mxu1 %v5613_v1  ;;  %3446 = vmatpush1.bf16.msra.mxu1 %v5556_v51 }
 0x4f1   :  { %3447 = vmatprep.subr.bf16.mxu1 %v5613_v1 }
 0x4f4   :  { %3448 = vmatpush1.bf16.msra.mxu1 %v5557_v58 }
 0x4f5   :  { %3449 = vmatprep.subr.bf16.mxu1 %v5613_v1 }
 0x4f7   :  { %4738 = vmatmul.mubr.msk.bf16.gmra.mrb[124].mxu1 %vm2474_vm4, %v6739_v47  ;;  %v5561_v47 = vld [vmem:[%s7263_s7 + $0x48] sm:$0xff]  }
 0x4f8   :  { %3248 = vmatprep.mubr.bf16.mxu1 %v5613_v1  ;;  %3450 = vmatpush1.bf16.msra.mxu1 %v5558_v17 }
 0x4f9   :  { %3451 = vmatprep.subr.bf16.mxu1 %v5613_v1 }
 0x4fc   :  { %3452 = vmatpush1.bf16.msra.mxu1 %v5559_v26 }
 0x4fd   :  { %3453 = vmatprep.subr.bf16.mxu1 %v5613_v1 }
 0x4ff   :  { %4739 = vmatmul.mubr.msk.bf16.gmra.mrb[128].mxu1 %vm2474_vm4, %v6767_v62 }
 0x500   :  { %3454 = vmatpush1.bf16.msra.mxu1 %v5560_v56  ;;  %v5567_v56 = vld [vmem:[%s7264_s8 + $0x28] sm:$0xff]  }
 0x501   :  { %3455 = vmatprep.subr.bf16.mxu1 %v5613_v1 }
 0x504   :  { %3456 = vmatpush1.bf16.msra.mxu1 %v5561_v47 }
 0x505   :  { %3590 = vmatprep.subr.bf16.mxu1 %v5613_v1 }
 0x5b2   :  { %v3210_v43 = vpop.f32.mrb[112].mxu1 }
 0x5b3   :  { %v3291_v33 = vadd.f32 %v6974_v59, %v3210_v43  ;;  %v3212_v22 = vpop.f32.mrb[113].mxu1 }
 0x5b4   :  { %v3292_v54 = vadd.f32 %v6978_v16, %v3212_v22  ;;  %v3214_v62 = vpop.f32.mrb[114].mxu1 }
 0x5b5   :  { %v3293_v44 = vadd.f32 %v6974_v59, %v3214_v62  ;;  %v3216_v5 = vpop.f32.mrb[115].mxu1  ;;  %v3311_v4 = vmax.f32 %v3291_v33, 0.0 }
 0x5b6   :  { %v3294_v2 = vadd.f32 %v6978_v16, %v3216_v5  ;;  %v3312_v0 = vmax.f32 %v3292_v54, 0.0  ;;  %v5568_v54 = vld [vmem:[%s7264_s8 + $0x30] sm:$0xff]  }
 0x5b7   :  { %v3313_v18 = vmax.f32 %v3293_v44, 0.0 }
 0x5b8   :  { %v3314_v45 = vmax.f32 %v3294_v2, 0.0 }
 0x5b9   :  { %v6984_v14 = vpack.c.bf16 %v3313_v18, %v3311_v4 }
 0x5ba   :  { %v6986_v60 = vpack.c.bf16 %v3314_v45, %v3312_v0  ;;  %v3220_v15 = vpop.f32.mrb[116].mxu1  ;;  %v5569_v45 = vld [vmem:[%s7264_s8 + $0x38] sm:$0xff]  }
 0x5bb   :  { %v3295_v21 = vadd.f32 %v6974_v59, %v3220_v15  ;;  %v3222_v9 = vpop.f32.mrb[117].mxu1 }
 0x5bc   :  { %v3296_v40 = vadd.f32 %v6978_v16, %v3222_v9  ;;  %v3224_v24 = vpop.f32.mrb[118].mxu1  ;;  %4750 = vmatprep.mubr.msk.bf16.mxu1 %vm3421_vm5, %v6986_v60 }
 0x5bd   :  { %v3297_v30 = vadd.f32 %v6974_v59, %v3224_v24  ;;  %v3226_v37 = vpop.f32.mrb[119].mxu1  ;;  %3470 = vmatmul.mubr.bf16.vlgmr.msra.gmra.mrb[132].mxu1 %v6984_v14  ;;  %v3315_v34 = vmax.f32 %v3295_v21, 0.0 }
 0x5be   :  { %v3298_v7 = vadd.f32 %v6978_v16, %v3226_v37  ;;  %3591 = vmatpush1.bf16.msra.mxu1 %v5562_v52  ;;  %v3316_v38 = vmax.f32 %v3296_v40, 0.0  ;;  %v5578_v37 = vld [vmem:[%s7265_s9 + $0x68] sm:$0xff]  }
 0x5bf   :  { %v3317_v50 = vmax.f32 %v3297_v30, 0.0  ;;  %3592 = vmatprep.subr.bf16.mxu1 %v5613_v1  ;;  %v5577_v30 = vld [vmem:[%s7265_s9 + $0x38] sm:$0xff]  }
 0x5c0   :  { %v3318_v55 = vmax.f32 %v3298_v7, 0.0  ;;  %v5579_v7 = vld [vmem:[%s7265_s9 + $0x40] sm:$0xff]  }
 0x5c1   :  { %v7002_v63 = vpack.c.bf16 %v3317_v50, %v3315_v34  ;;  %v5582_v34 = vld [vmem:[%s7265_s9 + $0x70] sm:$0xff]  }
 0x5c2   :  { %v7004_v6 = vpack.c.bf16 %v3318_v55, %v3316_v38  ;;  %v3230_v53 = vpop.f32.mrb[120].mxu1  ;;  %3593 = vmatpush1.bf16.msra.mxu1 %v5563_v36  ;;  %v5580_v36 = vld [vmem:[%s7265_s9 + $0x48] sm:$0xff]  }
 0x5c3   :  { %v3299_v32 = vadd.f32 %v6974_v59, %v3230_v53  ;;  %v3232_v57 = vpop.f32.mrb[121].mxu1  ;;  %3594 = vmatprep.subr.bf16.mxu1 %v5613_v1 }
 0x5c4   :  { %v3300_v12 = vadd.f32 %v6978_v16, %v3232_v57  ;;  %v3234_v42 = vpop.f32.mrb[122].mxu1  ;;  %4751 = vmatprep.mubr.msk.bf16.mxu1 %vm3421_vm5, %v7004_v6 }
 0x5c5   :  { %v3301_v3 = vadd.f32 %v6974_v59, %v3234_v42  ;;  %v3236_v61 = vpop.f32.mrb[123].mxu1  ;;  %3478 = vmatmul.mubr.bf16.gmra.mrb[136].mxu1 %v7002_v63  ;;  %v3319_v48 = vmax.f32 %v3299_v32, 0.0 }
 0x5c6   :  { %v3302_v27 = vadd.f32 %v6978_v16, %v3236_v61  ;;  %3595 = vmatpush1.bf16.msra.mxu1 %v5564_v10  ;;  %v3320_v20 = vmax.f32 %v3300_v12, 0.0 }
 0x5c7   :  { %v3321_v11 = vmax.f32 %v3301_v3, 0.0  ;;  %3596 = vmatprep.subr.bf16.mxu1 %v5613_v1 }
 0x5c8   :  { %v3322_v39 = vmax.f32 %v3302_v27, 0.0 }
 0x5c9   :  { %v3335_v23 = vpack.c.bf16 %v3321_v11, %v3319_v48 }
 0x5ca   :  { %v3336_v25 = vpack.c.bf16 %v3322_v39, %v3320_v20  ;;  %v3240_v13 = vpop.f32.mrb[124].mxu1  ;;  %3597 = vmatpush1.bf16.msra.mxu1 %v5565_v28 }
 0x5cb   :  { %v3303_v8 = vadd.f32 %v6974_v59, %v3240_v13  ;;  %v3242_v31 = vpop.f32.mrb[125].mxu1  ;;  %3598 = vmatprep.subr.bf16.mxu1 %v5613_v1 }
 0x5cc   :  { %v3304_v49 = vadd.f32 %v6978_v16, %v3242_v31  ;;  %v3244_v51 = vpop.f32.mrb[126].mxu1  ;;  %4752 = vmatprep.mubr.msk.bf16.mxu1 %vm3421_vm5, %v3336_v25 }
 0x5cd   :  { %v3305_v58 = vadd.f32 %v6974_v59, %v3244_v51  ;;  %v3246_v17 = vpop.f32.mrb[127].mxu1  ;;  %3486 = vmatmul.mubr.bf16.gmra.mrb[140].mxu1 %v3335_v23  ;;  %v3323_v47 = vmax.f32 %v3303_v8, 0.0 }
 0x5ce   :  { %v3306_v26 = vadd.f32 %v6978_v16, %v3246_v17  ;;  %3599 = vmatpush1.bf16.msra.mxu1 %v5566_v29  ;;  %v3324_v41 = vmax.f32 %v3304_v49, 0.0 }
 0x5cf   :  { %v3325_v35 = vmax.f32 %v3305_v58, 0.0  ;;  %3600 = vmatprep.subr.bf16.mxu1 %v5613_v1 }
 0x5d0   :  { %v3326_v46 = vmax.f32 %v3306_v26, 0.0 }
 0x5d1   :  { %v3337_v43 = vpack.c.bf16 %v3325_v35, %v3323_v47 }
 0x5d2   :  { %v3338_v33 = vpack.c.bf16 %v3326_v46, %v3324_v41  ;;  %v3250_v22 = vpop.f32.mrb[128].mxu1  ;;  %3601 = vmatpush1.bf16.msra.mxu1 %v5567_v56 }
 0x5d3   :  { %v3307_v62 = vadd.f32 %v6974_v59, %v3250_v22  ;;  %v3252_v44 = vpop.f32.mrb[129].mxu1  ;;  %3602 = vmatprep.subr.bf16.mxu1 %v5613_v1 }
 0x5d4   :  { %v3308_v5 = vadd.f32 %v6978_v16, %v3252_v44  ;;  %v3254_v2 = vpop.f32.mrb[130].mxu1  ;;  %4753 = vmatprep.mubr.msk.bf16.mxu1 %vm3421_vm5, %v3338_v33 }
 0x5d5   :  { %v3309_v4 = vadd.f32 %v6974_v59, %v3254_v2  ;;  %v3256_v18 = vpop.f32.mrb[131].mxu1  ;;  %3494 = vmatmul.mubr.bf16.gmra.mrb[144].mxu1 %v3337_v43  ;;  %v3327_v15 = vmax.f32 %v3307_v62, 0.0  ;;  %v5570_v59 = vld [vmem:[%s7264_s8 + $0x40] sm:$0xff]  }
 0x5d6   :  { %v3310_v0 = vadd.f32 %v6978_v16, %v3256_v18  ;;  %3603 = vmatpush1.bf16.msra.mxu1 %v5568_v54  ;;  %v3328_v21 = vmax.f32 %v3308_v5, 0.0  ;;  %v5571_v16 = vld [vmem:[%s7264_s8 + $0x48] sm:$0xff]  }
 0x5d7   :  { %v3329_v52 = vmax.f32 %v3309_v4, 0.0  ;;  %3604 = vmatprep.subr.bf16.mxu1 %v5613_v1  ;;  %v5583_v4 = vld [vmem:[%s7265_s9 + $0x8] sm:$0xff]  }
 0x5d8   :  { %v3330_v9 = vmax.f32 %v3310_v0, 0.0 }
 0x5d9   :  { %v3339_v40 = vpack.c.bf16 %v3329_v52, %v3327_v15 }
 0x5da   :  { %v3340_v24 = vpack.c.bf16 %v3330_v9, %v3328_v21  ;;  %3605 = vmatpush1.bf16.msra.mxu1 %v5569_v45  ;;  %v5584_v45 = vld [vmem:[%s7265_s9 + $0x10] sm:$0xff]  }
 0x5db   :  { %3606 = vmatprep.subr.bf16.mxu1 %v5613_v1 }
 0x5dc   :  { %4754 = vmatprep.mubr.msk.bf16.mxu1 %vm3421_vm5, %v3340_v24 }
 0x5dd   :  { %3502 = vmatmul.mubr.bf16.gmra.mrb[148].mxu1 %v3339_v40 }
 0x5de   :  { %3607 = vmatpush1.bf16.msra.mxu1 %v5570_v59  ;;  %4765 = vmatprep.mubr.msk.bf16.mxu1 %vm3421_vm5, %v6986_v60  ;;  %v5576_v60 = vld [vmem:[%s7265_s9 + $0x30] sm:$0xff]  }
 0x5df   :  { %3608 = vmatprep.subr.bf16.mxu1 %v5613_v1  ;;  %v5574_v1 = vld [vmem:[%s7265_s9 + $0x60] sm:$0xff]  }
 0x5e0   :  { %4940 = vmatpush3.bf16.msra.mxu0 %v5574_v1 }
 0x5e1   :  { %4941 = vmatprep.subr.bf16.mxu0 %v5614_v19 }
 0x5e2   :  { %3609 = vmatpush1.bf16.msra.mxu1 %v5571_v16  ;;  %v5586_v16 = vld [vmem:[%s7265_s9 + $0xa0] sm:$0xff]  }
 0x5e3   :  { %4907 = vmatprep.subr.bf16.mxu1 %v5614_v19 }
 0x5e4   :  { %4942 = vmatpush3.bf16.msra.mxu0 %v5578_v37 }
 0x5e5   :  { %3623 = vmatmul.mubr.bf16.vlgmr.msra.gmra.mrb[152].mxu1 %v6984_v14  ;;  %v5575_v14 = vld [vmem:[%s7265_s9 + $0x28] sm:$0xff]   ;;  %4943 = vmatprep.subr.bf16.mxu0 %v5614_v19 }
 0x5e6   :  { %4766 = vmatprep.mubr.msk.bf16.mxu1 %vm3421_vm5, %v7004_v6  ;;  %4908 = vmatpush3.bf16.msra.mxu1 %v5575_v14 }
 0x5e7   :  { %4909 = vmatprep.subr.bf16.mxu1 %v5614_v19 }
 0x5e8   :  { %4944 = vmatpush3.bf16.msra.mxu0 %v5582_v34 }
 0x5e9   :  { %4963 = vmatprep.subr.bf16.mxu0 %v5614_v19 }
 0x5ea   :  { %4910 = vmatpush3.bf16.msra.mxu1 %v5576_v60  ;;  %v5587_v60 = vld [vmem:[%s7265_s9 + $0x20] sm:$0xff]  }
 0x5eb   :  { %4911 = vmatprep.subr.bf16.mxu1 %v5614_v19 }
 0x5ed   :  { %3631 = vmatmul.mubr.bf16.gmra.mrb[156].mxu1 %v7002_v63 }
 0x5ee   :  { %4767 = vmatprep.mubr.msk.bf16.mxu1 %vm3421_vm5, %v3336_v25  ;;  %4912 = vmatpush3.bf16.msra.mxu1 %v5577_v30 }
 0x5ef   :  { %4913 = vmatprep.subr.bf16.mxu1 %v5614_v19 }
 0x5f2   :  { %4914 = vmatpush3.bf16.msra.mxu1 %v5579_v7 }
 0x5f3   :  { %4915 = vmatprep.subr.bf16.mxu1 %v5614_v19 }
 0x5f5   :  { %3639 = vmatmul.mubr.bf16.gmra.mrb[160].mxu1 %v3335_v23 }
 0x5f6   :  { %4768 = vmatprep.mubr.msk.bf16.mxu1 %vm3421_vm5, %v3338_v33  ;;  %4916 = vmatpush3.bf16.msra.mxu1 %v5580_v36  ;;  %v5581_v33 = vld [vmem:[%s7265_s9] sm:$0xff]   ;;  %v5588_v36 = vld [vmem:[%s7265_s9 + $0xa8] sm:$0xff]  }
 0x5f7   :  { %4921 = vmatprep.subr.bf16.mxu1 %v5614_v19 }
 0x5fd   :  { %3647 = vmatmul.mubr.bf16.gmra.mrb[164].mxu1 %v3337_v43 }
 0x5fe   :  { %4769 = vmatprep.mubr.msk.bf16.mxu1 %vm3421_vm5, %v3340_v24  ;;  %v5585_v24 = vld [vmem:[%s7265_s9 + $0x18] sm:$0xff]  }
 0x605   :  { %3655 = vmatmul.mubr.bf16.gmra.mrb[168].mxu1 %v3339_v40 }
 0x606   :  { %4917 = vmatprep.mubr.msk.bf16.mxu1 %vm5615_vm6, %v5614_v19 }
 0x690   :  { %v3471_v50 = vpop.f32.mrb[132].mxu1 }
 0x691   :  { %v3473_v38 = vpop.f32.mrb[133].mxu1 }
 0x692   :  { %v3474_v55 = vpop.f32.mrb[134].mxu1  ;;  %v5589_v38 = vld [vmem:[%s7265_s9 + $0x78] sm:$0xff]  }
 0x693   :  { %v3476_v63 = vpop.f32.mrb[135].mxu1 }
 0x694   :  { %v5590_v63 = vld [vmem:[%s7265_s9 + $0xb0] sm:$0xff]  }
 0x698   :  { %v3479_v6 = vpop.f32.mrb[136].mxu1 }
 0x699   :  { %v3481_v53 = vpop.f32.mrb[137].mxu1 }
 0x69a   :  { %v3482_v10 = vpop.f32.mrb[138].mxu1  ;;  %v5592_v53 = vld [vmem:[%s7265_s9 + $0xb8] sm:$0xff]  }
 0x69b   :  { %v3484_v32 = vpop.f32.mrb[139].mxu1 }
 0x69c   :  { %v5594_v32 = vld [vmem:[%s7265_s9 + $0xc0] sm:$0xff]  }
 0x6a0   :  { %v3487_v57 = vpop.f32.mrb[140].mxu1 }
 0x6a1   :  { %v3489_v12 = vpop.f32.mrb[141].mxu1 }
 0x6a2   :  { %v3490_v42 = vpop.f32.mrb[142].mxu1 }
 0x6a3   :  { %v3492_v3 = vpop.f32.mrb[143].mxu1 }
 0x6a8   :  { %v3495_v61 = vpop.f32.mrb[144].mxu1 }
 0x6a9   :  { %v3497_v27 = vpop.f32.mrb[145].mxu1 }
 0x6aa   :  { %v3498_v28 = vpop.f32.mrb[146].mxu1  ;;  %v5598_v27 = vld [vmem:[%s7267_s11 + $0x8] sm:$0xff]  }
 0x6ab   :  { %v3500_v48 = vpop.f32.mrb[147].mxu1 }
 0x6ac   :  { %v5600_v48 = vld [vmem:[%s7267_s11 + $0x18] sm:$0xff]  }
 0x6b0   :  { %v7102_v11 = vpop.f32.mrb[148].mxu1 }
 0x6b1   :  { %v3505_v20 = vpop.f32.mrb[149].mxu1 }
 0x6b2   :  { %v7104_v39 = vpop.f32.mrb[150].mxu1  ;;  %v5602_v20 = vld [vmem:[%s7267_s11 + $0x28] sm:$0xff]  }
 0x6b3   :  { %v3508_v23 = vpop.f32.mrb[151].mxu1 }
 0x6b4   :  { %v5604_v23 = vld [vmem:[%s7267_s11 + $0x38] sm:$0xff]  }
 0x6b8   :  { %v3624_v25 = vpop.f32.mrb[152].mxu1 }
 0x6b9   :  { %v3663_v13 = vmax.f32 %v3471_v50, %v3624_v25  ;;  %v3626_v29 = vpop.f32.mrb[153].mxu1  ;;  %v5605_v25 = vld [vmem:[%s7268_s13] sm:$0xff]  }
 0x6ba   :  { %v3627_v8 = vpop.f32.mrb[154].mxu1  ;;  %v5607_v29 = vld [vmem:[%s7268_s13 + $0x10] sm:$0xff]  }
 0x6bb   :  { %v3664_v31 = vmax.f32 %v3474_v55, %v3627_v8  ;;  %v3629_v49 = vpop.f32.mrb[155].mxu1  ;;  %v5608_v8 = vld [vmem:[%s7268_s13 + $0x18] sm:$0xff]  }
 0x6bc   :  { %v5610_v49 = vld [vmem:[%s7268_s13 + $0x28] sm:$0xff]  }
 0x6bd   :  { %v3673_v51 = vmax.f32 %v3663_v13, %v3664_v31  ;;  %v5606_v13 = vld [vmem:[%s7268_s13 + $0x8] sm:$0xff]   ;;  %v5609_v31 = vld [vmem:[%s7268_s13 + $0x20] sm:$0xff]  }
 0x6c0   :  { %v3632_v58 = vpop.f32.mrb[156].mxu1 }
 0x6c1   :  { %v3665_v17 = vmax.f32 %v3479_v6, %v3632_v58  ;;  %v3634_v26 = vpop.f32.mrb[157].mxu1  ;;  %v5591_v6 = vld [vmem:[%s7265_s9 + $0x80] sm:$0xff]  }
 0x6c2   :  { %v3635_v56 = vpop.f32.mrb[158].mxu1 }
 0x6c3   :  { %v3666_v47 = vmax.f32 %v3482_v10, %v3635_v56  ;;  %v3637_v35 = vpop.f32.mrb[159].mxu1  ;;  %v5593_v10 = vld [vmem:[%s7265_s9 + $0x88] sm:$0xff]  }
 0x6c5   :  { %v3674_v41 = vmax.f32 %v3665_v17, %v3666_v47 }
 0x6c7   :  { %v3678_v46 = vpack.c.bf16 %v3674_v41, %v3673_v51 }
 0x6c8   :  { %v3640_v43 = vpop.f32.mrb[160].mxu1 }
 0x6c9   :  { %v3703_v22 = vrot.slane %v3678_v46, 4  ;;  %v3667_v54 = vmax.f32 %v3487_v57, %v3640_v43  ;;  %v3642_v62 = vpop.f32.mrb[161].mxu1  ;;  %v5595_v57 = vld [vmem:[%s7265_s9 + $0x90] sm:$0xff]  }
 0x6ca   :  { %v3643_v44 = vpop.f32.mrb[162].mxu1 }
 0x6cb   :  { %v3668_v5 = vmax.f32 %v3490_v42, %v3643_v44  ;;  %v3645_v2 = vpop.f32.mrb[163].mxu1  ;;  %4918 = vmatmul.mubr.msk.bf16.vlgmr.msra.gmra.mrb[172].mxu1 %vm3734_vm7, %v3703_v22  ;;  %v5596_v42 = vld [vmem:[%s7265_s9 + $0x98] sm:$0xff]  }
 0x6cc   :  { %4922 = vmatpush3.bf16.msra.mxu1 %v5581_v33  ;;  %4931 = vmatprep.mubr.msk.bf16.mxu1 %vm5615_vm6, %v5614_v19 }
 0x6cd   :  { %v3675_v18 = vmax.f32 %v3667_v54, %v3668_v5  ;;  %4923 = vmatprep.subr.bf16.mxu1 %v5614_v19 }
 0x6d0   :  { %4924 = vmatpush3.bf16.msra.mxu1 %v5583_v4  ;;  %v3648_v0 = vpop.f32.mrb[164].mxu1 }
 0x6d1   :  { %v3669_v15 = vmax.f32 %v3495_v61, %v3648_v0  ;;  %v3650_v52 = vpop.f32.mrb[165].mxu1  ;;  %4925 = vmatprep.subr.bf16.mxu1 %v5614_v19  ;;  %v5597_v61 = vld [vmem:[%s7267_s11] sm:$0xff]  }
 0x6d2   :  { %v3651_v21 = vpop.f32.mrb[166].mxu1 }
 0x6d3   :  { %v3670_v9 = vmax.f32 %v3498_v28, %v3651_v21  ;;  %v3653_v40 = vpop.f32.mrb[167].mxu1  ;;  %v5599_v28 = vld [vmem:[%s7267_s11 + $0x10] sm:$0xff]  }
 0x6d4   :  { %4926 = vmatpush3.bf16.msra.mxu1 %v5584_v45 }
 0x6d5   :  { %v3676_v59 = vmax.f32 %v3669_v15, %v3670_v9  ;;  %4927 = vmatprep.subr.bf16.mxu1 %v5614_v19  ;;  %v4840_v15 = vld [vmem:[%s7269_s10] ss:$0 sm:$0xff] }
 0x6d7   :  { %v3679_v1 = vpack.c.bf16 %v3676_v59, %v3675_v18 }
 0x6d8   :  { %4928 = vmatpush3.bf16.msra.mxu1 %v5585_v24  ;;  %v3656_v14 = vpop.f32.mrb[168].mxu1 }
 0x6d9   :  { %v3671_v30 = vmax.f32 %v7102_v11, %v3656_v14  ;;  %v3658_v37 = vpop.f32.mrb[169].mxu1  ;;  %4946 = vmatmul.mubr.msk.bf16.vlgmr.msra.gmra.mrb[56].mxu0 %vm3734_vm7, %v3679_v1  ;;  %4929 = vmatprep.subr.bf16.mxu1 %v5614_v19  ;;  %v3948_v3 = vrot.slane %v3679_v1, 4  ;;  %v5601_v11 = vld [vmem:[%s7267_s11 + $0x20] sm:$0xff]   ;;  %v5612_v1 = vld [vmem:[%s7268_s13 + $0x38] sm:$0xff]  }
 0x6da   :  { %4964 = vmatpush3.bf16.msra.mxu0 %v5586_v16  ;;  %v3659_v7 = vpop.f32.mrb[170].mxu1  ;;  %4973 = vmatprep.mubr.msk.bf16.mxu0 %vm5615_vm6, %v5614_v19  ;;  %v5611_v16 = vld [vmem:[%s7268_s13 + $0x30] sm:$0xff]   ;;  %v4841_v14 = vld [vmem:[%s7270_s12] ss:$0 sm:$0xff] }
 0x6db   :  { %v3672_v34 = vmax.f32 %v7104_v39, %v3659_v7  ;;  %v3661_v50 = vpop.f32.mrb[171].mxu1  ;;  %4965 = vmatprep.subr.bf16.mxu0 %v5614_v19  ;;  %v5603_v39 = vld [vmem:[%s7267_s11 + $0x30] sm:$0xff]  }
 0x6dc   :  { %4930 = vmatpush3.bf16.msra.mxu1 %v5587_v60 }
 0x6dd   :  { %v3677_v55 = vmax.f32 %v3671_v30, %v3672_v34  ;;  %4949 = vmatprep.subr.bf16.mxu1 %v5614_v19 }
 0x6de   :  { %4966 = vmatpush3.bf16.msra.mxu0 %v5588_v36 }
 0x6df   :  { %4932 = vmatmul.mubr.msk.bf16.vlgmr.msra.gmra.mrb[176].mxu1 %vm3734_vm7, %v3678_v46  ;;  %4967 = vmatprep.subr.bf16.mxu0 %v5614_v19  ;;  %v3680_v12 = vpack.c.bf16 %v3677_v55, %v3677_v55 }
 0x6e0   :  { %4950 = vmatpush3.bf16.msra.mxu1 %v5589_v38  ;;  %4959 = vmatprep.mubr.msk.bf16.mxu1 %vm5615_vm6, %v5614_v19 }
 0x6e1   :  { %4951 = vmatprep.subr.bf16.mxu1 %v5614_v19 }
 0x6e2   :  { %4968 = vmatpush3.bf16.msra.mxu0 %v5590_v63 }
 0x6e3   :  { %4969 = vmatprep.subr.bf16.mxu0 %v5614_v19 }
 0x6e4   :  { %4952 = vmatpush3.bf16.msra.mxu1 %v5591_v6 }
 0x6e5   :  { %4953 = vmatprep.subr.bf16.mxu1 %v5614_v19 }
 0x6e6   :  { %4970 = vmatpush3.bf16.msra.mxu0 %v5592_v53 }
 0x6e7   :  { %4971 = vmatprep.subr.bf16.mxu0 %v5614_v19 }
 0x6e8   :  { %4954 = vmatpush3.bf16.msra.mxu1 %v5593_v10 }
 0x6e9   :  { %4955 = vmatprep.subr.bf16.mxu1 %v5614_v19 }
 0x6ea   :  { %4972 = vmatpush3.bf16.msra.mxu0 %v5594_v32 }
 0x6eb   :  { %4997 = vmatprep.subr.bf16.mxu0 %v5614_v19 }
 0x6ec   :  { %4956 = vmatpush3.bf16.msra.mxu1 %v5595_v57 }
 0x6ed   :  { %4974 = vmatmul.mubr.msk.bf16.vlgmr.msra.gmra.mrb[60].mxu0 %vm3734_vm7, %v3680_v12  ;;  %4957 = vmatprep.subr.bf16.mxu1 %v5614_v19 }
 0x6ee   :  { %5013 = vmatprep.mubr.msk.bf16.mxu0 %vm5615_vm6, %v5614_v19  ;;  %4998 = vmatpush3.bf16.msra.mxu0 %v5605_v25 }
 0x6ef   :  { %4999 = vmatprep.subr.bf16.mxu0 %v5614_v19 }
 0x6f0   :  { %4958 = vmatpush3.bf16.msra.mxu1 %v5596_v42 }
 0x6f1   :  { %4977 = vmatprep.subr.bf16.mxu1 %v5614_v19 }
 0x6f2   :  { %5000 = vmatpush3.bf16.msra.mxu0 %v5606_v13 }
 0x6f3   :  { %4960 = vmatmul.mubr.msk.bf16.vlgmr.msra.gmra.mrb[180].mxu1 %vm3734_vm7, %v3948_v3  ;;  %5001 = vmatprep.subr.bf16.mxu0 %v5614_v19 }
 0x6f4   :  { %4993 = vmatprep.mubr.msk.bf16.mxu1 %vm5615_vm6, %v5614_v19  ;;  %4978 = vmatpush3.bf16.msra.mxu1 %v5597_v61 }
 0x6f5   :  { %4979 = vmatprep.subr.bf16.mxu1 %v5614_v19 }
 0x6f6   :  { %5002 = vmatpush3.bf16.msra.mxu0 %v5607_v29 }
 0x6f7   :  { %5003 = vmatprep.subr.bf16.mxu0 %v5614_v19 }
 0x6f8   :  { %4980 = vmatpush3.bf16.msra.mxu1 %v5598_v27 }
 0x6f9   :  { %4981 = vmatprep.subr.bf16.mxu1 %v5614_v19 }
 0x6fa   :  { %5004 = vmatpush3.bf16.msra.mxu0 %v5608_v8 }
 0x6fb   :  { %5005 = vmatprep.subr.bf16.mxu0 %v5614_v19 }
 0x6fc   :  { %4982 = vmatpush3.bf16.msra.mxu1 %v5599_v28 }
 0x6fd   :  { %4983 = vmatprep.subr.bf16.mxu1 %v5614_v19 }
 0x6fe   :  { %5006 = vmatpush3.bf16.msra.mxu0 %v5609_v31 }
 0x6ff   :  { %5007 = vmatprep.subr.bf16.mxu0 %v5614_v19 }
 0x700   :  { %4984 = vmatpush3.bf16.msra.mxu1 %v5600_v48 }
 0x701   :  { %4985 = vmatprep.subr.bf16.mxu1 %v5614_v19 }
 0x702   :  { %5008 = vmatpush3.bf16.msra.mxu0 %v5610_v49 }
 0x703   :  { %5009 = vmatprep.subr.bf16.mxu0 %v5614_v19 }
 0x704   :  { %4986 = vmatpush3.bf16.msra.mxu1 %v5601_v11 }
 0x705   :  { %4987 = vmatprep.subr.bf16.mxu1 %v5614_v19 }
 0x706   :  { %5010 = vmatpush3.bf16.msra.mxu0 %v5611_v16 }
 0x707   :  { %5011 = vmatprep.subr.bf16.mxu0 %v5614_v19 }
 0x708   :  { %4988 = vmatpush3.bf16.msra.mxu1 %v5602_v20 }
 0x709   :  { %4989 = vmatprep.subr.bf16.mxu1 %v5614_v19 }
 0x70a   :  { %5012 = vmatpush3.bf16.msra.mxu0 %v5612_v1 }
 0x70c   :  { %4990 = vmatpush3.bf16.msra.mxu1 %v5603_v39 }
 0x70d   :  { %4991 = vmatprep.subr.bf16.mxu1 %v5614_v19  ;;  %v4850_v19 = vld [vmem:[%s7271_s14] ss:$0 sm:$0xff] }
 0x710   :  { %4992 = vmatpush3.bf16.msra.mxu1 %v5604_v23 }
 0x79e   :  { %v3772_v51 = vpop.f32.mrb[172].mxu1 }
 0x79f   :  { %v4919_v58 = vpop.f32.mrb[173].mxu1 }
 0x7a0   :  { %v3775_v17 = vpop.f32.mrb[174].mxu1 }
 0x7a1   :  { %v4920_v26 = vpop.f32.mrb[175].mxu1 }
 0x7ac   :  { %v3929_v56 = vpop.f32.mrb[56].mxu0 }
 0x7ad   :  { %v4947_v47 = vpop.f32.mrb[57].mxu0 }
 0x7ae   :  { %v3932_v35 = vpop.f32.mrb[58].mxu0 }
 0x7af   :  { %v4948_v41 = vpop.f32.mrb[59].mxu0 }
 0x7b2   :  { %v3845_v46 = vpop.f32.mrb[176].mxu1 }
 0x7b3   :  { %v3846_v43 = vadd.f32 %v3845_v46, %v3772_v51  ;;  %v4933_v33 = vpop.f32.mrb[177].mxu1 }
 0x7b4   :  { %v3848_v22 = vpop.f32.mrb[178].mxu1 }
 0x7b5   :  { %v4934_v54 = vpop.f32.mrb[179].mxu1  ;;  %v3935_v62 = vadd.f32 %v3929_v56, %v3846_v43 }
 0x7c0   :  { %v4101_v44 = vpop.f32.mrb[60].mxu0 }
 0x7c1   :  { %v4975_v5 = vpop.f32.mrb[61].mxu0 }
 0x7c2   :  { %v4104_v2 = vpop.f32.mrb[62].mxu0 }
 0x7c3   :  { %v4976_v4 = vpop.f32.mrb[63].mxu0 }
 0x7c6   :  { %v4016_v18 = vpop.f32.mrb[180].mxu1 }
 0x7c7   :  { %v4022_v0 = vadd.f32 %v4016_v18, %v3935_v62  ;;  %v4961_v45 = vpop.f32.mrb[181].mxu1 }
 0x7c8   :  { %v4019_v52 = vpop.f32.mrb[182].mxu1 }
 0x7c9   :  { %v4107_v21 = vadd.f32 %v4101_v44, %v4022_v0  ;;  %v4962_v9 = vpop.f32.mrb[183].mxu1 }
 0x7cb   :  { %v4115_v40 = vadd.f32 %v4840_v15, %v4107_v21 }
 0x7cd   :  { %v4116_v24 = vmax.f32 %v4115_v40, 0.0 }
 0x7cf   :  { %v4117_v59 = vpack.c.bf16 %v4116_v24, %v4116_v24 }
 0x7d1   :  { %4994 = vmatmul.mubr.bf16.vlgmr.msra.gmra.mrb[184].mxu1 %v4117_v59 }
 0x8a4   :  { %v4223_v60 = vpop.f32.mrb[184].mxu1 }
 0x8a5   :  { %v4224_v30 = vadd.f32 %v4841_v14, %v4223_v60  ;;  %v4995_v37 = vpop.f32.mrb[185].mxu1 }
 0x8a6   :  { %v4226_v7 = vpop.f32.mrb[186].mxu1 }
 0x8a7   :  { %v4229_v36 = vmax.f32 %v4224_v30, 0.0  ;;  %v4996_v34 = vpop.f32.mrb[187].mxu1 }
 0x8a9   :  { %v4230_v50 = vpack.c.bf16 %v4229_v36, %v4229_v36 }
 0x8ab   :  { %5014 = vmatmul.mubr.bf16.vlgmr.msra.gmra.mrb[64].mxu0 %v4230_v50 }
 0x97e   :  { %v4336_v38 = vpop.f32.mrb[64].mxu0 }
 0x97f   :  { %v4337_v55 = vadd.f32 %v4850_v19, %v4336_v38  ;;  %v5015_v63 = vpop.f32.mrb[65].mxu0 }
 0x980   :  { %v4339_v6 = vpop.f32.mrb[66].mxu0 }
 0x981   :  { %4342 = vst [vmem:[%s7272_s15] sm:$0xff] %v4337_v55  ;;  %v5016_v53 = vpop.f32.mrb[67].mxu0 }

</bundles_post_ra>
